<compile_context>
chip_gen: v7x
topology: tpu7x:2x2x1
jax: 0.10.0
libtpu: 0.0.40
codegen_flags: <defaults>
</compile_context>

<pallas_src>
import functools
import math
from typing import NamedTuple

import jax
import jax.numpy as jnp
from jax.experimental import pallas as pl
from jax.experimental.pallas import tpu as pltpu


class Config(NamedTuple):
    o_class: int
    d_class: int
    t_class: int
    w_class: int
    s_emb: int
    t_emb: int
    hid_dim: int
    head: int
    n_component: int
    d_rank: int
    t_a: float


# ----------------------------------------------------------------------------
# Fused kernel: [tau|one-hot] -> QKV (embeddings folded) -> multi-head
# attention -> out-proj -> GELU -> fused [o_linear|d1|d2] head (temporal layer
# folded) -> origin softmax + low-rank OD attention -> d_out.
# ----------------------------------------------------------------------------
def _mix_od_att_kernel(packed_ref, wqkv_ref, wo_ref, whead_ref, bhead_ref,
                       out_ref, *, tb, t_len, head, dh, hid,
                       o_class, d_class, d_rank, out_pad, scale):
    f32, bf16 = jnp.float32, jnp.bfloat16
    rows = tb * t_len
    n_in = wqkv_ref.shape[0]                       # 1 + (O + D + TC + WC)

    packed = packed_ref[...]                       # (rows, 8) f32
    tau = packed[:, 0:1]                           # (rows, 1)
    idx = packed[:, 1:5].astype(jnp.int32)         # class cols, offsets baked in

    # fused [tau | one-hot(o,d,t,w)] input slab; column 0 carries tau (no
    # separate embedding matmul, no lane-concat).
    col = jax.lax.broadcasted_iota(jnp.int32, (rows, n_in), 1)
    hot = ((col == idx[:, 0:1]) | (col == idx[:, 1:2]) |
           (col == idx[:, 2:3]) | (col == idx[:, 3:4]))
    x_in = jnp.where(col == 0, tau, hot.astype(f32))

    # embeddings + Q/K/V of all heads in ONE MXU matmul (embedding table,
    # embedding bias and QKV bias are pre-folded into wqkv_ref).
    qkv = jnp.dot(x_in.astype(bf16), wqkv_ref[...],
                  preferred_element_type=f32)       # (rows, 3*hid)

    # per-sample multi-head self-attention over the t_len axis, batched over
    # the TB samples of this tile (head count is tiny -> static unroll).
    qkv3 = qkv.reshape(tb, t_len, 3 * hid)
    outs = []
    for hh in range(head):
        q = qkv3[:, :, hh * dh:(hh + 1) * dh].astype(bf16)
        k = qkv3[:, :, hid + hh * dh:hid + (hh + 1) * dh].astype(bf16)
        v = qkv3[:, :, 2 * hid + hh * dh:2 * hid + (hh + 1) * dh].astype(bf16)
        s = jnp.einsum('bqd,bkd->bqk', q, k, preferred_element_type=f32) * scale
        s = s - jnp.max(s, axis=-1, keepdims=True)
        p = jnp.exp(s)
        p = p * pl.reciprocal(jnp.sum(p, axis=-1, keepdims=True), approx=True)
        outs.append(jnp.einsum('bqk,bkd->bqd', p.astype(bf16), v,
                               preferred_element_type=f32))
    o_cat = jnp.concatenate(outs, axis=-1).reshape(rows, hid)

    pre = jnp.dot(o_cat.astype(bf16), wo_ref[...], preferred_element_type=f32)
    # TODO(synk): PyTorch nn.GELU() defaults to the exact erf form; the tanh
    # approximation is used here for Mosaic-friendly lowering.
    c = math.sqrt(2.0 / math.pi)
    h = 0.5 * pre * (1.0 + jnp.tanh(c * (pre + 0.044715 * pre * pre * pre)))

    # fused [o_linear | d1 (rank-major) | d2 (rank-major)] head; the temporal
    # layer (w_tp/b_tp) is already folded into whead/bhead by the wrapper.
    hv = jnp.dot(h.astype(bf16), whead_ref[...],
                 preferred_element_type=f32) + bhead_ref[...]

    O, D, R = o_class, d_class, d_rank
    o_logits = hv[:, :O]
    o_logits = o_logits - jnp.max(o_logits, axis=-1, keepdims=True)
    o_exp = jnp.exp(o_logits)
    o_out = o_exp * pl.reciprocal(jnp.sum(o_exp, axis=-1, keepdims=True),
                                  approx=True)      # (rows, O)

    # rank-R OD matrix: od[n, f, e] = sum_r d1[n, f, r] * d2[n, e, r]
    # TODO(synk): for very large TB*T this block should be chunked over rows
    # to bound VMEM/vreg pressure; at these sizes it is tiny.
    od = None
    for r in range(R):                              # static unroll (R=2)
        d1_r = hv[:, O + r * O:O + (r + 1) * O]                     # (rows, O)
        d2_r = hv[:, O + R * O + r * D:O + R * O + (r + 1) * D]     # (rows, D)
        term = d1_r[:, :, None] * d2_r[:, None, :]                  # (rows,O,D)
        od = term if od is None else od + term

    # mask origin == destination (the reference's diag(ones(d_class)) mask
    # only broadcasts when o_class == d_class, which is mirrored here).
    rr = jax.lax.broadcasted_iota(jnp.int32, (O, D), 0)
    cc = jax.lax.broadcasted_iota(jnp.int32, (O, D), 1)
    od = jnp.where((rr == cc)[None, :, :], jnp.float32(-1e9), od)

    # destination softmax on a sublane-dense (rows*O, D) view.
    od2 = od.reshape(rows * O, D)
    od2 = od2 - jnp.max(od2, axis=-1, keepdims=True)
    od_exp = jnp.exp(od2)
    od_att = (od_exp * pl.reciprocal(jnp.sum(od_exp, axis=-1, keepdims=True),
                                     approx=True)).reshape(rows, O, D)

    # d_out[n, c] = sum_f o_out[n, f] * od_att[n, f, c]
    d_out = jnp.sum(o_out[:, :, None] * od_att, axis=1)             # (rows, D)

    # single lane-dense (rows, out_pad >= 128) output slab -> unmasked stores.
    pieces = [h, o_out, d_out]
    pad = out_pad - (hid + O + D)
    if pad > 0:
        pieces.append(jnp.zeros((rows, pad), f32))
    out_ref[...] = jnp.concatenate(pieces, axis=-1)


def _pick_batch_tile(B, T, target_rows=256):
    """Samples per grid step: aim for >= ~256 MXU rows per step, keep >= 2
    grid steps (two v7x TensorCores) when that doesn't starve the MXU, and
    keep the block's sublane extent 8-aligned unless it spans the batch."""
    tb = max(1, min(B, max(1, target_rows // max(T, 1))))
    while B % tb:
        tb -= 1
    if B // tb < 2 and B >= 2 and (tb // 2) * T >= target_rows:
        tb = max(1, tb // 2)
        while B % tb:
            tb -= 1
    if tb < B and (tb * T) % 8 != 0:
        tb = B
    return tb


def mix_od_att_pallas(packed, wqkv, w_attout, w_headc, b_headc, *,
                      batch, t_len, head, dh, hid_dim,
                      o_class, d_class, d_rank):
    B, T = batch, t_len
    out_w = hid_dim + o_class + d_class
    out_pad = max(128, ((out_w + 127) // 128) * 128)   # lane-dense output slab
    tb = _pick_batch_tile(B, T)
    rows = tb * T

    kernel = functools.partial(
        _mix_od_att_kernel, tb=tb, t_len=T, head=head, dh=dh, hid=hid_dim,
        o_class=o_class, d_class=d_class, d_rank=d_rank, out_pad=out_pad,
        scale=1.0 / math.sqrt(dh))

    return pl.pallas_call(
        kernel,
        out_shape=jax.ShapeDtypeStruct((B * T, out_pad), jnp.float32),
        grid_spec=pltpu.PrefetchScalarGridSpec(
            num_scalar_prefetch=0,
            grid=(B // tb,),
            in_specs=[
                pl.BlockSpec((rows, packed.shape[1]), lambda b: (b, 0)),
                pl.BlockSpec(wqkv.shape, lambda b: (0, 0)),
                pl.BlockSpec(w_attout.shape, lambda b: (0, 0)),
                pl.BlockSpec(w_headc.shape, lambda b: (0, 0)),
                pl.BlockSpec(b_headc.shape, lambda b: (0, 0)),
            ],
            out_specs=pl.BlockSpec((rows, out_pad), lambda b: (b, 0)),
        ),
        compiler_params=pltpu.CompilerParams(
            dimension_semantics=("parallel",)),   # shards steps over v7x's 2 TCs
    )(packed, wqkv, w_attout, w_headc, b_headc)


# ----------------------------------------------------------------------------
# Wrapper: fold embedding tables, all biases and the temporal layer into the
# fused bf16 weight layouts (a handful of tiny XLA ops under jit), pack the
# per-row scalars, call the kernel once and split the output slab.
# ----------------------------------------------------------------------------
@functools.partial(jax.jit, static_argnames=('cfg',))
def forward(params, tau_input, o_input, d_input, t_input, w_input, cfg):
    O, D, TC, WC = cfg.o_class, cfg.d_class, cfg.t_class, cfg.w_class
    S, TE, H, NH, R = cfg.s_emb, cfg.t_emb, cfg.hid_dim, cfg.head, cfg.d_rank
    C4 = 4 * cfg.n_component
    dh = H // NH
    E = 2 * S + 2 * TE
    n_cls = O + D + TC + WC
    B, T, _ = tau_input.shape

    # ---- fold embedding tables + all QKV/embedding biases into one weight ---
    def fuse_heads(w):          # (NH, F_in, dh) -> (F_in, NH*dh), head-major
        return jnp.transpose(w, (1, 0, 2)).reshape(w.shape[1], NH * dh)
    wqkv_full = jnp.concatenate(
        [fuse_heads(params['wq']), fuse_heads(params['wk']),
         fuse_heads(params['wv'])], axis=-1)                      # (1+E, 3H)
    bqkv_full = jnp.concatenate(
        [params['bq'].reshape(1, NH * dh), params['bk'].reshape(1, NH * dh),
         params['bv'].reshape(1, NH * dh)], axis=-1)              # (1, 3H)

    w_emb = jnp.zeros((n_cls, E), jnp.float32)                    # block-diag
    w_emb = w_emb.at[:O, :S].set(params['origin_w'])
    w_emb = w_emb.at[O:O + D, S:2 * S].set(params['destin_w'])
    w_emb = w_emb.at[O + D:O + D + TC, 2 * S:2 * S + TE].set(params['time_table'])
    w_emb = w_emb.at[O + D + TC:, 2 * S + TE:].set(params['week_table'])
    b_emb = jnp.concatenate([params['origin_b'], params['destin_b'],
                             jnp.zeros((2 * TE,), jnp.float32)])[None, :]

    w_tau = wqkv_full[0:1]                                        # (1, 3H)
    w_rest = wqkv_full[1:]                                        # (E, 3H)
    w_cls = w_emb @ w_rest                                        # (n_cls, 3H)
    b_fold = b_emb @ w_rest + bqkv_full                           # (1, 3H)
    # exactly one origin class fires per row -> fold the bias into its rows
    w_cls = w_cls.at[:O, :].add(b_fold)
    wqkv = jnp.concatenate([w_tau, w_cls], axis=0).astype(jnp.bfloat16)

    w_attout = params['w_attout'].reshape(NH * dh, H).astype(jnp.bfloat16)

    # ---- fold the temporal layer (w_tp/b_tp) through [o_linear | d1 | d2] ---
    def rank_major(w):          # (R, X, width) -> (X, R*width), rank-major cols
        return jnp.transpose(w, (1, 0, 2)).reshape(w.shape[1], -1)
    w_head_tp = jnp.concatenate(
        [params['w_o_tp'], rank_major(params['w_d1_tp']),
         rank_major(params['w_d2_tp'])], axis=-1)                 # (C4, W)
    w_head_h = jnp.concatenate(
        [params['w_o_h'], rank_major(params['w_d1_h']),
         rank_major(params['w_d2_h'])], axis=-1)                  # (H, W)
    b_head = jnp.concatenate(
        [params['b_o'],
         jnp.transpose(params['b_d1'], (1, 0, 2)).reshape(1, -1),
         jnp.transpose(params['b_d2'], (1, 0, 2)).reshape(1, -1)], axis=-1)
    w_headc = (params['w_tp'] @ w_head_tp + w_head_h).astype(jnp.bfloat16)
    b_headc = params['b_tp'] @ w_head_tp + b_head                 # (1, W) f32

    # ---- pack tau + offset class indices into a single per-row input --------
    idx = jnp.stack([o_input.astype(jnp.float32) + 1.0,
                     d_input.astype(jnp.float32) + 1.0 + O,
                     t_input.astype(jnp.float32) + 1.0 + O + D,
                     w_input.astype(jnp.float32) + 1.0 + O + D + TC], axis=-1)
    packed = jnp.concatenate(
        [tau_input, idx, jnp.zeros((B, T, 3), jnp.float32)],
        axis=-1).reshape(B * T, 8)

    out = mix_od_att_pallas(packed, wqkv, w_attout, w_headc, b_headc,
                            batch=B, t_len=T, head=NH, dh=dh, hid_dim=H,
                            o_class=O, d_class=D, d_rank=R)
    hidden_state = out[:, :H].reshape(B, T, H)
    o_out = out[:, H:H + O].reshape(B, T, O)
    d_out = out[:, H + O:H + O + D].reshape(B, T, D)
    return hidden_state, o_out, d_out


# Pure-JAX reference (same math, f32) used only for a numerical sanity check.
def forward_ref(params, tau_input, o_input, d_input, t_input, w_input, cfg):
    o_emb = params['origin_w'][o_input] + params['origin_b']
    d_emb = params['destin_w'][d_input] + params['destin_b']
    t_emb = params['time_table'][t_input]
    w_emb = params['week_table'][w_input]
    x = jnp.concatenate([tau_input, o_emb, d_emb, t_emb, w_emb], axis=-1)

    head, hid_dim = cfg.head, cfg.hid_dim
    dh = hid_dim // head
    pre = 0.0
    for hh in range(head):
        q = x @ params['wq'][hh] + params['bq'][hh]
        k = x @ params['wk'][hh] + params['bk'][hh]
        v = x @ params['wv'][hh] + params['bv'][hh]
        s = jnp.einsum('bqd,bkd->bqk', q, k) / math.sqrt(dh)
        p = jax.nn.softmax(s, axis=-1)
        pre = pre + jnp.einsum('bqk,bkd->bqd', p, v) @ params['w_attout'][hh]
    c = math.sqrt(2.0 / math.pi)
    h = 0.5 * pre * (1.0 + jnp.tanh(c * (pre + 0.044715 * pre ** 3)))

    tp = h @ params['w_tp'] + params['b_tp']
    o_out = jax.nn.softmax(tp @ params['w_o_tp'] + h @ params['w_o_h']
                           + params['b_o'], axis=-1)
    od = 0.0
    for r in range(cfg.d_rank):
        d1_r = tp @ params['w_d1_tp'][r] + h @ params['w_d1_h'][r] + params['b_d1'][r]
        d2_r = tp @ params['w_d2_tp'][r] + h @ params['w_d2_h'][r] + params['b_d2'][r]
        od = od + d1_r[..., :, None] * d2_r[..., None, :]
    eye = jnp.eye(cfg.d_class, dtype=jnp.float32)
    od = od * (1.0 - eye) + (-1e9) * eye
    od_att = jax.nn.softmax(od, axis=-1)
    d_out = jnp.einsum('btd,btdc->btc', o_out, od_att)
    return h, o_out, d_out


def init_params(key, cfg):
    O, D = cfg.o_class, cfg.d_class
    TC, WC = cfg.t_class, cfg.w_class
    S, TE = cfg.s_emb, cfg.t_emb
    H, NH, R = cfg.hid_dim, cfg.head, cfg.d_rank
    C4 = 4 * cfg.n_component
    dh = H // NH
    F_in = 2 * S + 2 * TE + 1
    ks = jax.random.split(key, 24)
    n = lambda k, shp: (0.1 * jax.random.normal(k, shp)).astype(jnp.float32)
    return dict(
        origin_w=n(ks[0], (O, S)), origin_b=n(ks[1], (S,)),
        destin_w=n(ks[2], (D, S)), destin_b=n(ks[3], (S,)),
        time_table=n(ks[4], (TC, TE)), week_table=n(ks[5], (WC, TE)),
        wq=n(ks[6], (NH, F_in, dh)), bq=n(ks[7], (NH, 1, dh)),
        wk=n(ks[8], (NH, F_in, dh)), bk=n(ks[9], (NH, 1, dh)),
        wv=n(ks[10], (NH, F_in, dh)), bv=n(ks[11], (NH, 1, dh)),
        w_attout=n(ks[12], (NH, dh, H)),
        w_tp=n(ks[13], (H, C4)), b_tp=n(ks[14], (1, C4)),
        w_o_tp=n(ks[15], (C4, O)), w_o_h=n(ks[16], (H, O)), b_o=n(ks[17], (1, O)),
        w_d1_tp=n(ks[18], (R, C4, O)), w_d1_h=n(ks[19], (R, H, O)), b_d1=n(ks[20], (R, 1, O)),
        w_d2_tp=n(ks[21], (R, C4, D)), w_d2_h=n(ks[22], (R, H, D)), b_d2=n(ks[23], (R, 1, D)),
    )


if __name__ == "__main__":
    cfg = Config(o_class=16, d_class=16, t_class=24, w_class=7,
                 s_emb=8, t_emb=4, hid_dim=32, head=2,
                 n_component=2, d_rank=2, t_a=1.0)
    B, T = 2, 8

    key = jax.random.PRNGKey(0)
    pkey, k1, k2, k3, k4, k5 = jax.random.split(key, 6)
    params = init_params(pkey, cfg)

    tau_input = jax.random.uniform(k1, (B, T, 1), dtype=jnp.float32)
    o_input = jax.random.randint(k2, (B, T), 0, cfg.o_class)
    d_input = jax.random.randint(k3, (B, T), 0, cfg.d_class)
    t_input = jax.random.randint(k4, (B, T), 0, cfg.t_class)
    w_input = jax.random.randint(k5, (B, T), 0, cfg.w_class)

    hidden_state, o_out, d_out = forward(params, tau_input, o_input, d_input,
                                         t_input, w_input, cfg=cfg)
    jax.block_until_ready((hidden_state, o_out, d_out))

    with jax.default_matmul_precision('highest'):
        h_r, o_r, d_r = forward_ref(params, tau_input, o_input, d_input,
                                    t_input, w_input, cfg)
    # bf16 MXU operands (f32 accumulate) + approx-reciprocal softmax -> allow
    # a slightly wider tolerance than the pure-f32 version.
    atol, rtol = 3e-3, 3e-2
    assert jnp.allclose(hidden_state, h_r, atol=atol, rtol=rtol), \
        float(jnp.max(jnp.abs(hidden_state - h_r)))
    assert jnp.allclose(o_out, o_r, atol=atol, rtol=rtol), \
        float(jnp.max(jnp.abs(o_out - o_r)))
    assert jnp.allclose(d_out, d_r, atol=atol, rtol=rtol), \
        float(jnp.max(jnp.abs(d_out - d_r)))

    print("KERNEL_OK")
</pallas_src>

<mosaic_0001>
module attributes {stable_mosaic.version = 11 : i64} {
  func.func @_mix_od_att_kernel(%arg0: i32, %arg1: memref<16x8xf32, #tpu.memory_space<vmem>>, %arg2: memref<64x96xbf16, #tpu.memory_space<vmem>>, %arg3: memref<32x32xbf16, #tpu.memory_space<vmem>>, %arg4: memref<32x80xbf16, #tpu.memory_space<vmem>>, %arg5: memref<1x80xf32, #tpu.memory_space<vmem>>, %arg6: memref<16x128xf32, #tpu.memory_space<vmem>>) attributes {dimension_semantics = [#tpu.dimension_semantics<parallel>], iteration_bounds = array<i64: 1>, scalar_prefetch = 0 : i64, scratch_operands = 0 : i64, tpu.core_type = #tpu.core_type<tc>, window_params = [{transform_indices = @transform_0, window_bounds = array<i64: 16, 8>}, {pipeline_mode = #tpu.pipeline_mode<synchronous>, transform_indices = @transform_1, window_bounds = array<i64: 64, 96>}, {pipeline_mode = #tpu.pipeline_mode<synchronous>, transform_indices = @transform_2, window_bounds = array<i64: 32, 32>}, {pipeline_mode = #tpu.pipeline_mode<synchronous>, transform_indices = @transform_3, window_bounds = array<i64: 32, 80>}, {pipeline_mode = #tpu.pipeline_mode<synchronous>, transform_indices = @transform_4, window_bounds = array<i64: 1, 80>}, {transform_indices = @transform_5, window_bounds = array<i64: 16, 128>}]} {
    %c0 = arith.constant 0 : index
    %c0_0 = arith.constant 0 : index
    %0 = vector.load %arg1[%c0, %c0_0] : memref<16x8xf32, #tpu.memory_space<vmem>>, vector<16x8xf32>
    %1 = vector.extract_strided_slice %0 {offsets = [0, 0], sizes = [16, 1], strides = [1, 1]} : vector<16x8xf32> to vector<16x1xf32>
    %2 = vector.extract_strided_slice %0 {offsets = [0, 1], sizes = [16, 4], strides = [1, 1]} : vector<16x8xf32> to vector<16x4xf32>
    %3 = arith.fptosi %2 : vector<16x4xf32> to vector<16x4xi32>
    %4 = tpu.iota {dimensions = array<i32: 1>} : vector<16x64xi32>
    %5 = vector.extract_strided_slice %3 {offsets = [0, 0], sizes = [16, 1], strides = [1, 1]} : vector<16x4xi32> to vector<16x1xi32>
    %6 = vector.broadcast %5 : vector<16x1xi32> to vector<16x64xi32>
    %7 = arith.cmpi eq, %4, %6 : vector<16x64xi32>
    %8 = vector.extract_strided_slice %3 {offsets = [0, 1], sizes = [16, 1], strides = [1, 1]} : vector<16x4xi32> to vector<16x1xi32>
    %9 = vector.broadcast %8 : vector<16x1xi32> to vector<16x64xi32>
    %10 = arith.cmpi eq, %4, %9 : vector<16x64xi32>
    %11 = arith.ori %7, %10 : vector<16x64xi1>
    %12 = vector.extract_strided_slice %3 {offsets = [0, 2], sizes = [16, 1], strides = [1, 1]} : vector<16x4xi32> to vector<16x1xi32>
    %13 = vector.broadcast %12 : vector<16x1xi32> to vector<16x64xi32>
    %14 = arith.cmpi eq, %4, %13 : vector<16x64xi32>
    %15 = arith.ori %11, %14 : vector<16x64xi1>
    %16 = vector.extract_strided_slice %3 {offsets = [0, 3], sizes = [16, 1], strides = [1, 1]} : vector<16x4xi32> to vector<16x1xi32>
    %17 = vector.broadcast %16 : vector<16x1xi32> to vector<16x64xi32>
    %18 = arith.cmpi eq, %4, %17 : vector<16x64xi32>
    %19 = arith.ori %15, %18 : vector<16x64xi1>
    %c0_i32 = arith.constant 0 : i32
    %20 = vector.broadcast %c0_i32 : i32 to vector<16x64xi32>
    %21 = arith.cmpi eq, %4, %20 : vector<16x64xi32>
    %22 = arith.extui %19 : vector<16x64xi1> to vector<16x64xi32>
    %23 = arith.sitofp %22 : vector<16x64xi32> to vector<16x64xf32>
    %24 = vector.shape_cast %1 : vector<16x1xf32> to vector<16x1xf32>
    %25 = vector.broadcast %24 : vector<16x1xf32> to vector<16x64xf32>
    %26 = arith.select %21, %25, %23 : vector<16x64xi1>, vector<16x64xf32>
    %27 = arith.truncf %26 : vector<16x64xf32> to vector<16x64xbf16>
    %c0_1 = arith.constant 0 : index
    %c0_2 = arith.constant 0 : index
    %28 = vector.load %arg2[%c0_1, %c0_2] : memref<64x96xbf16, #tpu.memory_space<vmem>>, vector<64x96xbf16>
    %cst = arith.constant dense<0.000000e+00> : vector<16x96xf32>
    %29 = tpu.matmul %27, %28, %cst {dimension_numbers = #tpu.dot_dimension_numbers<[1], [0], [0], [1], [0, 0, 1, 1], [], []>} : vector<16x64xbf16>, vector<64x96xbf16>, vector<16x96xf32> -> vector<16x96xf32>
    %30 = vector.shape_cast %29 : vector<16x96xf32> to vector<2x8x96xf32>
    %31 = vector.extract_strided_slice %30 {offsets = [0, 0, 0], sizes = [2, 8, 16], strides = [1, 1, 1]} : vector<2x8x96xf32> to vector<2x8x16xf32>
    %32 = arith.truncf %31 : vector<2x8x16xf32> to vector<2x8x16xbf16>
    %33 = vector.extract_strided_slice %30 {offsets = [0, 0, 32], sizes = [2, 8, 16], strides = [1, 1, 1]} : vector<2x8x96xf32> to vector<2x8x16xf32>
    %34 = arith.truncf %33 : vector<2x8x16xf32> to vector<2x8x16xbf16>
    %35 = vector.extract_strided_slice %30 {offsets = [0, 0, 64], sizes = [2, 8, 16], strides = [1, 1, 1]} : vector<2x8x96xf32> to vector<2x8x16xf32>
    %36 = arith.truncf %35 : vector<2x8x16xf32> to vector<2x8x16xbf16>
    "tpu.trace_start"() <{level = 10 : i32, message = "bqd,bkd->bqk"}> : () -> ()
    %cst_3 = arith.constant dense<0.000000e+00> : vector<2x8x8xf32>
    %37 = tpu.matmul %32, %34, %cst_3 {dimension_numbers = #tpu.dot_dimension_numbers<[2], [2], [1], [1], [0, 0, 0, 1, 1, 1], [0], [0]>} : vector<2x8x16xbf16>, vector<2x8x16xbf16>, vector<2x8x8xf32> -> vector<2x8x8xf32>
    "tpu.trace_stop"() : () -> ()
    %cst_4 = arith.constant 2.500000e-01 : f32
    %38 = vector.broadcast %cst_4 : f32 to vector<2x8x8xf32>
    %39 = arith.mulf %37, %38 : vector<2x8x8xf32>
    %cst_5 = arith.constant dense<0xFF800000> : vector<2x8xf32>
    %40 = vector.multi_reduction <maximumf>, %39, %cst_5 [2] : vector<2x8x8xf32> to vector<2x8xf32>
    %41 = vector.shape_cast %40 : vector<2x8xf32> to vector<2x8x1xf32>
    %42 = vector.broadcast %41 : vector<2x8x1xf32> to vector<2x8x8xf32>
    %43 = arith.subf %39, %42 : vector<2x8x8xf32>
    %44 = math.exp %43 : vector<2x8x8xf32>
    %cst_6 = arith.constant dense<0.000000e+00> : vector<2x8xf32>
    %45 = vector.multi_reduction <add>, %44, %cst_6 [2] : vector<2x8x8xf32> to vector<2x8xf32>
    %46 = vector.shape_cast %45 : vector<2x8xf32> to vector<2x8x1xf32>
    %47 = tpu.reciprocal %46 {approx = true} : vector<2x8x1xf32> -> vector<2x8x1xf32>
    %48 = vector.broadcast %47 : vector<2x8x1xf32> to vector<2x8x8xf32>
    %49 = arith.mulf %44, %48 : vector<2x8x8xf32>
    %50 = arith.truncf %49 : vector<2x8x8xf32> to vector<2x8x8xbf16>
    "tpu.trace_start"() <{level = 10 : i32, message = "bqk,bkd->bqd"}> : () -> ()
    %cst_7 = arith.constant dense<0.000000e+00> : vector<2x8x16xf32>
    %51 = tpu.matmul %50, %36, %cst_7 {dimension_numbers = #tpu.dot_dimension_numbers<[2], [1], [1], [2], [0, 0, 0, 1, 1, 2], [0], [0]>} : vector<2x8x8xbf16>, vector<2x8x16xbf16>, vector<2x8x16xf32> -> vector<2x8x16xf32>
    "tpu.trace_stop"() : () -> ()
    %52 = vector.extract_strided_slice %30 {offsets = [0, 0, 16], sizes = [2, 8, 16], strides = [1, 1, 1]} : vector<2x8x96xf32> to vector<2x8x16xf32>
    %53 = arith.truncf %52 : vector<2x8x16xf32> to vector<2x8x16xbf16>
    %54 = vector.extract_strided_slice %30 {offsets = [0, 0, 48], sizes = [2, 8, 16], strides = [1, 1, 1]} : vector<2x8x96xf32> to vector<2x8x16xf32>
    %55 = arith.truncf %54 : vector<2x8x16xf32> to vector<2x8x16xbf16>
    %56 = vector.extract_strided_slice %30 {offsets = [0, 0, 80], sizes = [2, 8, 16], strides = [1, 1, 1]} : vector<2x8x96xf32> to vector<2x8x16xf32>
    %57 = arith.truncf %56 : vector<2x8x16xf32> to vector<2x8x16xbf16>
    "tpu.trace_start"() <{level = 10 : i32, message = "bqd,bkd->bqk"}> : () -> ()
    %cst_8 = arith.constant dense<0.000000e+00> : vector<2x8x8xf32>
    %58 = tpu.matmul %53, %55, %cst_8 {dimension_numbers = #tpu.dot_dimension_numbers<[2], [2], [1], [1], [0, 0, 0, 1, 1, 1], [0], [0]>} : vector<2x8x16xbf16>, vector<2x8x16xbf16>, vector<2x8x8xf32> -> vector<2x8x8xf32>
    "tpu.trace_stop"() : () -> ()
    %cst_9 = arith.constant 2.500000e-01 : f32
    %59 = vector.broadcast %cst_9 : f32 to vector<2x8x8xf32>
    %60 = arith.mulf %58, %59 : vector<2x8x8xf32>
    %cst_10 = arith.constant dense<0xFF800000> : vector<2x8xf32>
    %61 = vector.multi_reduction <maximumf>, %60, %cst_10 [2] : vector<2x8x8xf32> to vector<2x8xf32>
    %62 = vector.shape_cast %61 : vector<2x8xf32> to vector<2x8x1xf32>
    %63 = vector.broadcast %62 : vector<2x8x1xf32> to vector<2x8x8xf32>
    %64 = arith.subf %60, %63 : vector<2x8x8xf32>
    %65 = math.exp %64 : vector<2x8x8xf32>
    %cst_11 = arith.constant dense<0.000000e+00> : vector<2x8xf32>
    %66 = vector.multi_reduction <add>, %65, %cst_11 [2] : vector<2x8x8xf32> to vector<2x8xf32>
    %67 = vector.shape_cast %66 : vector<2x8xf32> to vector<2x8x1xf32>
    %68 = tpu.reciprocal %67 {approx = true} : vector<2x8x1xf32> -> vector<2x8x1xf32>
    %69 = vector.broadcast %68 : vector<2x8x1xf32> to vector<2x8x8xf32>
    %70 = arith.mulf %65, %69 : vector<2x8x8xf32>
    %71 = arith.truncf %70 : vector<2x8x8xf32> to vector<2x8x8xbf16>
    "tpu.trace_start"() <{level = 10 : i32, message = "bqk,bkd->bqd"}> : () -> ()
    %cst_12 = arith.constant dense<0.000000e+00> : vector<2x8x16xf32>
    %72 = tpu.matmul %71, %57, %cst_12 {dimension_numbers = #tpu.dot_dimension_numbers<[2], [1], [1], [2], [0, 0, 0, 1, 1, 2], [0], [0]>} : vector<2x8x8xbf16>, vector<2x8x16xbf16>, vector<2x8x16xf32> -> vector<2x8x16xf32>
    "tpu.trace_stop"() : () -> ()
    %73 = tpu.concatenate %51, %72 in 2 : vector<2x8x16xf32>, vector<2x8x16xf32> -> vector<2x8x32xf32>
    %74 = vector.shape_cast %73 : vector<2x8x32xf32> to vector<16x32xf32>
    %75 = arith.truncf %74 : vector<16x32xf32> to vector<16x32xbf16>
    %c0_13 = arith.constant 0 : index
    %c0_14 = arith.constant 0 : index
    %76 = vector.load %arg3[%c0_13, %c0_14] : memref<32x32xbf16, #tpu.memory_space<vmem>>, vector<32x32xbf16>
    %cst_15 = arith.constant dense<0.000000e+00> : vector<16x32xf32>
    %77 = tpu.matmul %75, %76, %cst_15 {dimension_numbers = #tpu.dot_dimension_numbers<[1], [0], [0], [1], [0, 0, 1, 1], [], []>} : vector<16x32xbf16>, vector<32x32xbf16>, vector<16x32xf32> -> vector<16x32xf32>
    %cst_16 = arith.constant 5.000000e-01 : f32
    %78 = vector.broadcast %cst_16 : f32 to vector<16x32xf32>
    %79 = arith.mulf %78, %77 : vector<16x32xf32>
    %cst_17 = arith.constant 4.471500e-02 : f32
    %80 = vector.broadcast %cst_17 : f32 to vector<16x32xf32>
    %81 = arith.mulf %80, %77 : vector<16x32xf32>
    %82 = arith.mulf %81, %77 : vector<16x32xf32>
    %83 = arith.mulf %82, %77 : vector<16x32xf32>
    %84 = arith.addf %77, %83 : vector<16x32xf32>
    %cst_18 = arith.constant 0.797884583 : f32
    %85 = vector.broadcast %cst_18 : f32 to vector<16x32xf32>
    %86 = arith.mulf %85, %84 : vector<16x32xf32>
    %87 = math.tanh %86 : vector<16x32xf32>
    %cst_19 = arith.constant 1.000000e+00 : f32
    %88 = vector.broadcast %cst_19 : f32 to vector<16x32xf32>
    %89 = arith.addf %88, %87 : vector<16x32xf32>
    %90 = arith.mulf %79, %89 : vector<16x32xf32>
    %91 = arith.truncf %90 : vector<16x32xf32> to vector<16x32xbf16>
    %c0_20 = arith.constant 0 : index
    %c0_21 = arith.constant 0 : index
    %92 = vector.load %arg4[%c0_20, %c0_21] : memref<32x80xbf16, #tpu.memory_space<vmem>>, vector<32x80xbf16>
    %cst_22 = arith.constant dense<0.000000e+00> : vector<16x80xf32>
    %93 = tpu.matmul %91, %92, %cst_22 {dimension_numbers = #tpu.dot_dimension_numbers<[1], [0], [0], [1], [0, 0, 1, 1], [], []>} : vector<16x32xbf16>, vector<32x80xbf16>, vector<16x80xf32> -> vector<16x80xf32>
    %c0_23 = arith.constant 0 : index
    %c0_24 = arith.constant 0 : index
    %94 = vector.load %arg5[%c0_23, %c0_24] : memref<1x80xf32, #tpu.memory_space<vmem>>, vector<1x80xf32>
    %95 = vector.broadcast %94 : vector<1x80xf32> to vector<16x80xf32>
    %96 = arith.addf %93, %95 : vector<16x80xf32>
    %97 = vector.extract_strided_slice %96 {offsets = [0, 0], sizes = [16, 16], strides = [1, 1]} : vector<16x80xf32> to vector<16x16xf32>
    %cst_25 = arith.constant dense<0xFF800000> : vector<16xf32>
    %98 = vector.multi_reduction <maximumf>, %97, %cst_25 [1] : vector<16x16xf32> to vector<16xf32>
    %99 = vector.shape_cast %98 : vector<16xf32> to vector<16x1xf32>
    %100 = vector.broadcast %99 : vector<16x1xf32> to vector<16x16xf32>
    %101 = arith.subf %97, %100 : vector<16x16xf32>
    %102 = math.exp %101 : vector<16x16xf32>
    %cst_26 = arith.constant dense<0.000000e+00> : vector<16xf32>
    %103 = vector.multi_reduction <add>, %102, %cst_26 [1] : vector<16x16xf32> to vector<16xf32>
    %104 = vector.shape_cast %103 : vector<16xf32> to vector<16x1xf32>
    %105 = tpu.reciprocal %104 {approx = true} : vector<16x1xf32> -> vector<16x1xf32>
    %106 = vector.broadcast %105 : vector<16x1xf32> to vector<16x16xf32>
    %107 = arith.mulf %102, %106 : vector<16x16xf32>
    %108 = vector.extract_strided_slice %96 {offsets = [0, 16], sizes = [16, 16], strides = [1, 1]} : vector<16x80xf32> to vector<16x16xf32>
    %109 = vector.extract_strided_slice %96 {offsets = [0, 48], sizes = [16, 16], strides = [1, 1]} : vector<16x80xf32> to vector<16x16xf32>
    %110 = vector.shape_cast %108 : vector<16x16xf32> to vector<16x16x1xf32>
    %111 = vector.shape_cast %109 : vector<16x16xf32> to vector<16x1x16xf32>
    %112 = vector.broadcast %110 : vector<16x16x1xf32> to vector<16x16x16xf32>
    %113 = vector.broadcast %111 : vector<16x1x16xf32> to vector<16x16x16xf32>
    %114 = arith.mulf %112, %113 : vector<16x16x16xf32>
    %115 = vector.extract_strided_slice %96 {offsets = [0, 32], sizes = [16, 16], strides = [1, 1]} : vector<16x80xf32> to vector<16x16xf32>
    %116 = vector.extract_strided_slice %96 {offsets = [0, 64], sizes = [16, 16], strides = [1, 1]} : vector<16x80xf32> to vector<16x16xf32>
    %117 = vector.shape_cast %115 : vector<16x16xf32> to vector<16x16x1xf32>
    %118 = vector.shape_cast %116 : vector<16x16xf32> to vector<16x1x16xf32>
    %119 = vector.broadcast %117 : vector<16x16x1xf32> to vector<16x16x16xf32>
    %120 = vector.broadcast %118 : vector<16x1x16xf32> to vector<16x16x16xf32>
    %121 = arith.mulf %119, %120 : vector<16x16x16xf32>
    %122 = arith.addf %114, %121 : vector<16x16x16xf32>
    %123 = tpu.iota {dimensions = array<i32: 0>} : vector<16x16xi32>
    %124 = tpu.iota {dimensions = array<i32: 1>} : vector<16x16xi32>
    %125 = arith.cmpi eq, %123, %124 : vector<16x16xi32>
    %126 = vector.shape_cast %125 : vector<16x16xi1> to vector<1x16x16xi1>
    %cst_27 = arith.constant -1.000000e+09 : f32
    %127 = vector.shape_cast %126 : vector<1x16x16xi1> to vector<1x16x16xi1>
    %128 = vector.broadcast %127 : vector<1x16x16xi1> to vector<16x16x16xi1>
    %129 = vector.broadcast %cst_27 : f32 to vector<16x16x16xf32>
    %130 = arith.select %128, %129, %122 : vector<16x16x16xi1>, vector<16x16x16xf32>
    %131 = vector.shape_cast %130 : vector<16x16x16xf32> to vector<256x16xf32>
    %cst_28 = arith.constant dense<0xFF800000> : vector<256xf32>
    %132 = vector.multi_reduction <maximumf>, %131, %cst_28 [1] : vector<256x16xf32> to vector<256xf32>
    %133 = vector.shape_cast %132 : vector<256xf32> to vector<256x1xf32>
    %134 = vector.broadcast %133 : vector<256x1xf32> to vector<256x16xf32>
    %135 = arith.subf %131, %134 : vector<256x16xf32>
    %136 = math.exp %135 : vector<256x16xf32>
    %cst_29 = arith.constant dense<0.000000e+00> : vector<256xf32>
    %137 = vector.multi_reduction <add>, %136, %cst_29 [1] : vector<256x16xf32> to vector<256xf32>
    %138 = vector.shape_cast %137 : vector<256xf32> to vector<256x1xf32>
    %139 = tpu.reciprocal %138 {approx = true} : vector<256x1xf32> -> vector<256x1xf32>
    %140 = vector.broadcast %139 : vector<256x1xf32> to vector<256x16xf32>
    %141 = arith.mulf %136, %140 : vector<256x16xf32>
    %142 = vector.shape_cast %141 : vector<256x16xf32> to vector<16x16x16xf32>
    %143 = vector.shape_cast %107 : vector<16x16xf32> to vector<16x16x1xf32>
    %144 = vector.broadcast %143 : vector<16x16x1xf32> to vector<16x16x16xf32>
    %145 = arith.mulf %144, %142 : vector<16x16x16xf32>
    %cst_30 = arith.constant dense<0.000000e+00> : vector<16x16xf32>
    %146 = vector.multi_reduction <add>, %145, %cst_30 [1] : vector<16x16x16xf32> to vector<16x16xf32>
    %cst_31 = arith.constant 0.000000e+00 : f32
    %147 = vector.broadcast %cst_31 : f32 to vector<16x64xf32>
    %148 = tpu.concatenate %90, %107, %146, %147 in 1 : vector<16x32xf32>, vector<16x16xf32>, vector<16x16xf32>, vector<16x64xf32> -> vector<16x128xf32>
    %c0_32 = arith.constant 0 : index
    %c0_33 = arith.constant 0 : index
    %149 = vector.load %arg6[%c0_32, %c0_33] : memref<16x128xf32, #tpu.memory_space<vmem>>, vector<16x128xf32>
    tpu.vector_store %arg6[%c0_32, %c0_33], %148 {strides = array<i32>} : memref<16x128xf32, #tpu.memory_space<vmem>>, vector<16x128xf32>,
    return
  }
  func.func @transform_0(%arg0: i32) -> (i32, i32) {
    %c0_i32 = arith.constant 0 : i32
    %c0_i32_0 = arith.constant 0 : i32
    return %arg0, %c0_i32 : i32, i32
  }
  func.func @transform_1(%arg0: i32) -> (i32, i32) {
    %c0_i32 = arith.constant 0 : i32
    %c0_i32_0 = arith.constant 0 : i32
    %c0_i32_1 = arith.constant 0 : i32
    return %c0_i32, %c0_i32_0 : i32, i32
  }
  func.func @transform_2(%arg0: i32) -> (i32, i32) {
    %c0_i32 = arith.constant 0 : i32
    %c0_i32_0 = arith.constant 0 : i32
    %c0_i32_1 = arith.constant 0 : i32
    return %c0_i32, %c0_i32_0 : i32, i32
  }
  func.func @transform_3(%arg0: i32) -> (i32, i32) {
    %c0_i32 = arith.constant 0 : i32
    %c0_i32_0 = arith.constant 0 : i32
    %c0_i32_1 = arith.constant 0 : i32
    return %c0_i32, %c0_i32_0 : i32, i32
  }
  func.func @transform_4(%arg0: i32) -> (i32, i32) {
    %c0_i32 = arith.constant 0 : i32
    %c0_i32_0 = arith.constant 0 : i32
    %c0_i32_1 = arith.constant 0 : i32
    return %c0_i32, %c0_i32_0 : i32, i32
  }
  func.func @transform_5(%arg0: i32) -> (i32, i32) {
    %c0_i32 = arith.constant 0 : i32
    %c0_i32_0 = arith.constant 0 : i32
    return %arg0, %c0_i32 : i32, i32
  }
}

</mosaic_0001>

<bundles_post_ra>
// kernel: forward.1
= control target key start
LH: loop header
LB: loop body
LE: loop exit
PB: predicated region body
PF: predicated region fallthrough
CT: control target
= control target key end

     0   :  { %v2774_v0 = vmov 2   ;;  %v2775_v1 = vmov 1   ;;  %v2776_v8 = vmov 0.0   ;;  %v2777_v9 = vmov 3   ;;  %s2782_s29 = smov 64   ;;  %s2783_s30 = smov 80   ;;  %s3962_s0 = inlined_call_operand.vmem [shape: f32[16,8], index: 0, kind: input, shape index: {}]   ;;  %s3963_s1 = inlined_call_operand.vmem [shape: bf16[64,96], index: 1, kind: input, shape index: {}]   ;;  %s3964_s2 = inlined_call_operand.vmem [shape: bf16[32,32], index: 2, kind: input, shape index: {}]   ;;  %s3965_s3 = inlined_call_operand.vmem [shape: bf16[32,80], index: 3, kind: input, shape index: {}]   ;;  %s3966_s4 = inlined_call_operand.vmem [shape: f32[1,80], index: 4, kind: input, shape index: {}]   ;;  %s3967_s5 = inlined_call_operand.vmem [shape: f32[16,128], index: 5, kind: output, shape index: {}]  }
   0x1   :  { %2593 = vset.pattern.permute.xlu1 %v2774_v0  ;;  %2592 = vset.pattern.permute.xlu0 %v2775_v1  ;;  %v21_v2 = vld [vmem:[%s3962_s0] sm:$0xff]  ;;  %v22_v3 = vld [vmem:[%s3962_s0 + $0x8] sm:$0xff]  ;;  %v2778_v12 = vmov 4   ;;  %v2612_v14 = vld [vmem:[%s3963_s1 + $0x10] sm:$0xff]   ;;  %v2779_v15 = vmov 0   ;;  %vm2780_vm0 = vmmov 0   ;;  %v25_v19 = vlaneseq }
   0x2   :  { %v2573_v4 = vtrunc.f32 %v21_v2  ;;  %v2575_v5 = vtrunc.f32 %v22_v3  ;;  %2497 = vmatprep.subr.bf16.mxu0 %v2776_v8  ;;  %2509 = vmatprep.subr.bf16.mxu1 %v2776_v8  ;;  %v2610_v10 = vld [vmem:[%s3963_s1] sm:$0xff]   ;;  %v2611_v11 = vld [vmem:[%s3963_s1 + $0x8] sm:$0xff]   ;;  %v2599_v13 = vpack.i.bf16 %v22_v3, %v21_v2  ;;  %v2613_v16 = vld [vmem:[%s3963_s1 + $0x18] sm:$0xff]   ;;  %s2781_s1 = smov 96   ;;  %s2784_s6 = smov 112  }
   0x3   :  { %2498 = vmatpush3.bf16.msra.mxu0 %v2610_v10  ;;  %2505 = vmatprep.mubr.msk.bf16.mxu0 %vm2780_vm0, %v2776_v8  ;;  %v2848_v22 = vand.u32 127, %v25_v19  ;;  %s2785_s7 = smov 48   ;;  %s2786_s12 = smov 16  }
   0x4   :  { %v2574_v6 = vcvt.f32.s32 %v2573_v4  ;;  %v2576_v7 = vcvt.f32.s32 %v2575_v5  ;;  %2499 = vmatprep.subr.bf16.mxu0 %v2776_v8  ;;  %2511 = vmatprep.mubr.msk.bf16.mxu1 %vm2780_vm0, %v2776_v8 }
   0x5   :  { %3979 = vst [vmem:[#allocation2_spill] sm:$0xff] %v2848_v22  ;;  %vm65_vm15 = vcmp.eq.s32.totalorder %v2848_v22, 0 }
   0x6   :  { %36 = vperm.xlu1 %2593, %v2574_v6   ;;  %28 = vperm.xlu0 %2592, %v2574_v6  }
   0x7   :  { %2500 = vmatpush3.bf16.msra.mxu0 %v2611_v11 }
   0x8   :  { %2501 = vmatprep.subr.bf16.mxu0 %v2776_v8 }
   0xa   :  { %39 = vperm.xlu1 %2593, %v2576_v7   ;;  %31 = vperm.xlu0 %2592, %v2576_v7  }
   0xb   :  { %2502 = vmatpush3.bf16.msra.mxu0 %v2612_v14 }
   0xc   :  { %2503 = vmatprep.subr.bf16.mxu0 %v2776_v8 }
   0xe   :  { %2595 = vset.pattern.permute.xlu1 %v2777_v9  ;;  %2594 = vset.pattern.permute.xlu0 %v2777_v9 }
   0xf   :  { %49 = vperm.xlu1 %2595, %v2576_v7   ;;  %46 = vperm.xlu0 %2594, %v2574_v6  }
  0x10   :  { %2504 = vmatpush3.bf16.msra.mxu0 %v2613_v16 }
  0x11   :  { %2521 = vmatprep.subr.bf16.mxu0 %v2776_v8 }
  0x13   :  { %2596 = vset.pattern.permute.xlu1 %v2778_v12  ;;  %2597 = vset.pattern.permute.xlu0 %v2778_v12 }
  0x14   :  { %56 = vperm.xlu1 %2596, %v2574_v6   ;;  %59 = vperm.xlu0 %2597, %v2576_v7  }
  0x18   :  { %2598 = vset.pattern.permute.xlu1 %v2779_v15  ;;  %2609 = vset.pattern.permute.xlu0 %v2779_v15 }
  0x19   :  { %2600 = vperm.xlu1 %2598, %v2599_v13  }
  0x85   :  { %v37_v17 = vpop.permute.xlu1 %36  ;;  %v29_v18 = vpop.permute.xlu0 %28 }
  0x86   :  { %vm41_vm1 = vcmp.eq.s32.totalorder %v2848_v22, %v37_v17  ;;  %vm33_vm2 = vcmp.eq.s32.totalorder %v2848_v22, %v29_v18 }
  0x87   :  { %vm43_vm6 = vmor %vm33_vm2, %vm41_vm1  ;;  %vm115_vm1 = vcmask 523264   ;;  %vm165_vm2 = vcmask 130048  }
  0x89   :  { %v40_v20 = vpop.permute.xlu1 %39  ;;  %v32_v21 = vpop.permute.xlu0 %31 }
  0x8a   :  { %vm42_vm3 = vcmp.eq.s32.totalorder %v2848_v22, %v40_v20  ;;  %vm34_vm4 = vcmp.eq.s32.totalorder %v2848_v22, %v32_v21 }
  0x8b   :  { %vm44_vm8 = vmor %vm34_vm4, %vm42_vm3  ;;  %vm263_vm3 = vcmask 64512   ;;  %vm293_vm4 = vcmask 1043456  }
  0x8e   :  { %v50_v23 = vpop.permute.xlu1 %49  ;;  %v47_v24 = vpop.permute.xlu0 %46 }
  0x8f   :  { %vm52_vm5 = vcmp.eq.s32.totalorder %v2848_v22, %v50_v23  ;;  %vm51_vm7 = vcmp.eq.s32.totalorder %v2848_v22, %v47_v24 }
  0x90   :  { %vm54_vm9 = vmor %vm44_vm8, %vm52_vm5  ;;  %vm2410_vm8 = vcmask 1042434  }
  0x91   :  { %vm53_vm12 = vmor %vm43_vm6, %vm51_vm7  ;;  %vm2408_vm7 = vcmask 1041409  }
  0x93   :  { %v57_v25 = vpop.permute.xlu1 %56  ;;  %v60_v26 = vpop.permute.xlu0 %59 }
  0x94   :  { %vm61_vm10 = vcmp.eq.s32.totalorder %v2848_v22, %v57_v25  ;;  %vm62_vm11 = vcmp.eq.s32.totalorder %v2848_v22, %v60_v26 }
  0x95   :  { %vm63_vm13 = vmor %vm53_vm12, %vm61_vm10  ;;  %vm2414_vm10 = vcmask 1044484   ;;  %vm2418_vm12 = vcmask 1046534  }
  0x96   :  { %vm64_vm14 = vmor %vm54_vm9, %vm62_vm11  ;;  %v2448_v30 = vsel %vm63_vm13, 1.0, %v2776_v8  ;;  %vm2412_vm9 = vcmask 1043459   ;;  %vm2416_vm11 = vcmask 1045509   ;;  %vm2420_vm13 = vcmask 1047559  }
  0x97   :  { %v2449_v31 = vsel %vm64_vm14, 1.0, %v2776_v8  ;;  %vm2437_vm14 = vcmask 392192  }
  0x98   :  { %v2601_v27 = vpop.permute.xlu1 %2600 }
  0x99   :  { %v2603_v28 = vunpack.i.h.bf16 %v2601_v27  ;;  %v2602_v29 = vunpack.i.l.bf16 %v2601_v27 }
  0x9b   :  { %v80_v32 = vsel %vm65_vm15, %v2602_v29, %v2448_v30  ;;  %v81_v33 = vsel %vm65_vm15, %v2603_v28, %v2449_v31 }
  0x9c   :  { %v82_v34 = vpack.c.bf16 %v81_v33, %v80_v32 }
  0x9e   :  { %2506 = vmatmul.mubr.msk.bf16.vlgmr.msra.gmra.mrb[0].mxu0 %vm115_vm1, %v82_v34 }
  0x9f   :  { %2523 = vmatprep.mubr.msk.bf16.mxu0 %vm2780_vm0, %v2776_v8 }
 0x171   :  { %v153_v35 = vpop.f32.mrb[0].mxu0 }
 0x172   :  { %v2864_v36 = vpack.c.bf16 %v153_v35, %v153_v35  ;;  %v2507_v37 = vpop.f32.mrb[1].mxu0 }
 0x173   :  { %v156_v38 = vpop.f32.mrb[2].mxu0 }
 0x174   :  { %v2866_v39 = vpack.c.bf16 %v156_v38, %v156_v38  ;;  %163 = vrot.lane.b32.xlu1 %v2864_v36, %s2781_s1  ;;  %v2508_v40 = vpop.f32.mrb[3].mxu0 }
 0x176   :  { %213 = vrot.lane.b32.xlu0 %v2866_v39, %s2781_s1 }
 0x1e6   :  { %v164_v41 = vpop.permute.xlu1 %163 }
 0x1e7   :  { %v170_v42 = vsel %vm165_vm2, %v164_v41, 0 }
 0x1e8   :  { %2510 = vmatpush3.bf16.xpose.msra.mxu1 %v170_v42  ;;  %v214_v43 = vpop.permute.xlu0 %213 }
 0x1e9   :  { %2515 = vmatprep.subr.bf16.mxu1 %v2776_v8  ;;  %v219_v44 = vsel %vm165_vm2, %v214_v43, 0 }
 0x1ef   :  { %2512 = vmatmul.mubr.msk.bf16.vlgmr.msra.gmra.mrb[0].mxu1 %vm165_vm2, %v2864_v36 }
 0x1f0   :  { %2516 = vmatpush3.bf16.xpose.msra.mxu1 %v219_v44  ;;  %2517 = vmatprep.mubr.msk.bf16.mxu1 %vm2780_vm0, %v2776_v8 }
 0x1f1   :  { %2527 = vmatprep.subr.bf16.mxu1 %v2776_v8 }
 0x1f7   :  { %2518 = vmatmul.mubr.msk.bf16.vlgmr.msra.gmra.mrb[4].mxu1 %vm165_vm2, %v2866_v39 }
 0x1f8   :  { %2529 = vmatprep.mubr.msk.bf16.mxu1 %vm2780_vm0, %v2776_v8 }
 0x2c2   :  { %v206_v45 = vpop.f32.mrb[0].mxu1 }
 0x2c3   :  { %v261_v46 = vmul.f32 0.25, %v206_v45  ;;  %v2513_v47 = vpop.f32.mrb[1].mxu1 }
 0x2c4   :  { %v209_v48 = vpop.f32.mrb[2].mxu1 }
 0x2c5   :  { %v2514_v49 = vpop.f32.mrb[3].mxu1  ;;  %v264_v50 = vsel %vm263_vm3, %v261_v46, -inf }
 0x2c6   :  { %265 = vmax.xlane.f32.xlu1 %v264_v50 }
 0x2ca   :  { %v255_v51 = vpop.f32.mrb[4].mxu1 }
 0x2cb   :  { %v262_v52 = vmul.f32 0.25, %v255_v51  ;;  %v2519_v53 = vpop.f32.mrb[5].mxu1 }
 0x2cc   :  { %v258_v54 = vpop.f32.mrb[6].mxu1 }
 0x2cd   :  { %v2520_v55 = vpop.f32.mrb[7].mxu1  ;;  %v267_v56 = vsel %vm263_vm3, %v262_v52, -inf }
 0x2ce   :  { %268 = vmax.xlane.f32.xlu0 %v267_v56 }
 0x2d7   :  { %337 = vrot.lane.b32.xlu1 %v2866_v39, %s2782_s29 }
 0x2e4   :  { %288 = vrot.lane.b32.xlu0 %v2864_v36, %s2782_s29 }
 0x353   :  { %v266_v57 = vpop.xlane.xlu1 %265 }
 0x354   :  { %v270_v58 = vsub.f32 %v261_v46, %v266_v57 }
 0x356   :  { %v272_v59 = vmul.f32 1.442695, %v270_v58 }
 0x357   :  { %v338_v60 = vpop.permute.xlu1 %337 }
 0x358   :  { %2618 = vpow2.f32 %v272_v59  ;;  %v343_v61 = vsel %vm293_vm4, %v338_v60, 0 }
 0x359   :  { %2528 = vmatpush3.bf16.msra.mxu1 %v343_v61 }
 0x35a   :  { %2539 = vmatprep.subr.bf16.mxu1 %v2776_v8 }
 0x35b   :  { %v269_v62 = vpop.xlane.xlu0 %268 }
 0x35c   :  { %v271_v63 = vsub.f32 %v262_v52, %v269_v62 }
 0x35e   :  { %v274_v0 = vmul.f32 1.442695, %v271_v63 }
 0x35f   :  { %v289_v1 = vpop.permute.xlu0 %288 }
 0x360   :  { %2620 = vpow2.f32 %v274_v0  ;;  %v295_v2 = vsel %vm293_vm4, %v289_v1, 0 }
 0x361   :  { %2522 = vmatpush3.bf16.msra.mxu0 %v295_v2  ;;  %v2614_v2 = vld [vmem:[%s3964_s2] sm:$0xff]  }
 0x362   :  { %v2619_v3 = vpop.eup %2618  ;;  %2533 = vmatprep.subr.bf16.mxu0 %v2776_v8 }
 0x363   :  { %v276_v4 = vsel %vm263_vm3, %v2619_v3, 0.0 }
 0x364   :  { %277 = vadd.xlane.f32.xlu0 %v276_v4 }
 0x36a   :  { %v2621_v5 = vpop.eup %2620 }
 0x36b   :  { %v279_v6 = vsel %vm263_vm3, %v2621_v5, 0.0 }
 0x36c   :  { %280 = vadd.xlane.f32.xlu1 %v279_v6 }
 0x37a   :  { %437 = vrot.lane.b32.xlu0 %v2866_v39, %s2783_s30 }
 0x37d   :  { %387 = vrot.lane.b32.xlu1 %v2864_v36, %s2783_s30 }
 0x37e   :  { %435 = vrot.lane.b32.xlu0 %v2866_v39, %s2784_s6 }
 0x381   :  { %385 = vrot.lane.b32.xlu1 %v2864_v36, %s2784_s6 }
 0x3f1   :  { %v278_v7 = vpop.xlane.xlu0 %277 }
 0x3f2   :  { %2622 = vrcp.f32 %v278_v7 }
 0x3f5   :  { %v438_v17 = vpop.permute.xlu0 %437 }
 0x3f6   :  { %v443_v21 = vsel %vm165_vm2, %v438_v17, 0 }
 0x3f9   :  { %v281_v9 = vpop.xlane.xlu1 %280  ;;  %v436_v23 = vpop.permute.xlu0 %435 }
 0x3fa   :  { %2624 = vrcp.f32 %v281_v9 }
 0x3fc   :  { %v2623_v10 = vpop.eup %2622 }
 0x3fd   :  { %v284_v11 = vmul.f32 %v2623_v10, %v2619_v3  ;;  %v388_v12 = vpop.permute.xlu1 %387  ;;  %v2615_v3 = vld [vmem:[%s3964_s2 + $0x8] sm:$0xff]  }
 0x3fe   :  { %v393_v14 = vsel %vm165_vm2, %v388_v12, 0 }
 0x3ff   :  { %v286_v13 = vpack.c.bf16 %v284_v11, %v284_v11 }
 0x401   :  { %2524 = vmatmul.mubr.msk.bf16.vlgmr.msra.gmra.mrb[4].mxu0 %vm263_vm3, %v286_v13  ;;  %v386_v20 = vpop.permute.xlu1 %385 }
 0x402   :  { %2534 = vmatpush3.bf16.xpose.msra.mxu0 %v393_v14  ;;  %2535 = vmatprep.mubr.msk.bf16.mxu0 %vm2780_vm0, %v2776_v8 }
 0x403   :  { %2545 = vmatprep.subr.bf16.mxu0 %v2776_v8 }
 0x404   :  { %v2625_v15 = vpop.eup %2624 }
 0x405   :  { %v285_v16 = vmul.f32 %v2625_v15, %v2621_v5 }
 0x407   :  { %v287_v18 = vpack.c.bf16 %v285_v16, %v285_v16 }
 0x409   :  { %2530 = vmatmul.mubr.msk.bf16.vlgmr.msra.gmra.mrb[8].mxu1 %vm263_vm3, %v287_v18  ;;  %2536 = vmatmul.mubr.msk.bf16.vlgmr.msra.gmra.mrb[8].mxu0 %vm165_vm2, %v386_v20 }
 0x40a   :  { %2540 = vmatpush3.bf16.xpose.msra.mxu1 %v443_v21  ;;  %2541 = vmatprep.mubr.msk.bf16.mxu1 %vm2780_vm0, %v2776_v8  ;;  %v2616_v21 = vld [vmem:[%s3965_s3] sm:$0xff]  }
 0x40b   :  { %2551 = vmatprep.subr.bf16.mxu1 %v2776_v8  ;;  %2547 = vmatprep.mubr.msk.bf16.mxu0 %vm2780_vm0, %v2776_v8 }
 0x411   :  { %2542 = vmatmul.mubr.msk.bf16.vlgmr.msra.gmra.mrb[12].mxu1 %vm165_vm2, %v436_v23  ;;  %v2617_v23 = vld [vmem:[%s3965_s3 + $0x8] sm:$0xff]  }
 0x412   :  { %2553 = vmatprep.mubr.msk.bf16.mxu1 %vm2780_vm0, %v2776_v8 }
 0x4d4   :  { %v2916_v24 = vpop.f32.mrb[4].mxu0 }
 0x4d5   :  { %v2525_v25 = vpop.f32.mrb[5].mxu0 }
 0x4d6   :  { %v334_v26 = vpop.f32.mrb[6].mxu0 }
 0x4d7   :  { %v2526_v27 = vpop.f32.mrb[7].mxu0 }
 0x4dc   :  { %v2918_v28 = vpop.f32.mrb[8].mxu1  ;;  %v429_v29 = vpop.f32.mrb[8].mxu0 }
 0x4dd   :  { %v485_v30 = vmul.f32 0.25, %v429_v29  ;;  %v2531_v31 = vpop.f32.mrb[9].mxu1  ;;  %v2537_v32 = vpop.f32.mrb[9].mxu0 }
 0x4de   :  { %v382_v33 = vpop.f32.mrb[10].mxu1  ;;  %v432_v34 = vpop.f32.mrb[10].mxu0 }
 0x4df   :  { %v2532_v35 = vpop.f32.mrb[11].mxu1  ;;  %v2538_v37 = vpop.f32.mrb[11].mxu0  ;;  %v487_v38 = vsel %vm263_vm3, %v485_v30, -inf }
 0x4e0   :  { %488 = vmax.xlane.f32.xlu1 %v487_v38 }
 0x4e4   :  { %v479_v40 = vpop.f32.mrb[12].mxu1 }
 0x4e5   :  { %v486_v41 = vmul.f32 0.25, %v479_v40  ;;  %v2543_v42 = vpop.f32.mrb[13].mxu1 }
 0x4e6   :  { %v482_v43 = vpop.f32.mrb[14].mxu1 }
 0x4e7   :  { %v2544_v44 = vpop.f32.mrb[15].mxu1  ;;  %v490_v45 = vsel %vm263_vm3, %v486_v41, -inf }
 0x4e8   :  { %491 = vmax.xlane.f32.xlu0 %v490_v45 }
 0x56d   :  { %v489_v46 = vpop.xlane.xlu1 %488 }
 0x56e   :  { %v493_v47 = vsub.f32 %v485_v30, %v489_v46 }
 0x570   :  { %v495_v48 = vmul.f32 1.442695, %v493_v47 }
 0x572   :  { %2626 = vpow2.f32 %v495_v48  ;;  %v2965_v48 = vshrl.u32 %v25_v19, 7 }
 0x574   :  { %3982 = vst [vmem:[#allocation5_spill] sm:$0xff] %v2965_v48 }
 0x575   :  { %v492_v49 = vpop.xlane.xlu0 %491 }
 0x576   :  { %v494_v50 = vsub.f32 %v486_v41, %v492_v49  ;;  %v2466_v49 = vld [vmem:[%s3966_s4] ss:$0 sm:$0xff]  ;;  %s2788_s4 = smov 32  }
 0x578   :  { %v497_v51 = vmul.f32 1.442695, %v494_v50  ;;  %v2971_v50 = vsub.s32 0, %v2965_v48 }
 0x57a   :  { %2628 = vpow2.f32 %v497_v51 }
 0x57c   :  { %v2627_v52 = vpop.eup %2626 }
 0x57d   :  { %v499_v53 = vsel %vm263_vm3, %v2627_v52, 0.0 }
 0x57e   :  { %500 = vadd.xlane.f32.xlu0 %v499_v53 }
 0x584   :  { %v2629_v54 = vpop.eup %2628 }
 0x585   :  { %v502_v55 = vsel %vm263_vm3, %v2629_v54, 0.0 }
 0x586   :  { %503 = vadd.xlane.f32.xlu1 %v502_v55 }
 0x594   :  { %511 = vrot.lane.b32.xlu0 %v2864_v36, %s2785_s7 }
 0x597   :  { %559 = vrot.lane.b32.xlu1 %v2866_v39, %s2785_s7 }
 0x60b   :  { %v501_v56 = vpop.xlane.xlu0 %500 }
 0x60c   :  { %2630 = vrcp.f32 %v501_v56 }
 0x60f   :  { %v512_v57 = vpop.permute.xlu0 %511 }
 0x610   :  { %v517_v58 = vsel %vm293_vm4, %v512_v57, 0 }
 0x611   :  { %2546 = vmatpush3.bf16.msra.mxu0 %v517_v58  ;;  %v2982_v58 = vsub.s32 1, %v2965_v48 }
 0x612   :  { %2557 = vmatprep.subr.bf16.mxu0 %v2776_v8 }
 0x613   :  { %v504_v59 = vpop.xlane.xlu1 %503 }
 0x614   :  { %2632 = vrcp.f32 %v504_v59 }
 0x616   :  { %v2631_v60 = vpop.eup %2630 }
 0x617   :  { %v560_v61 = vpop.permute.xlu1 %559  ;;  %v507_v62 = vmul.f32 %v2631_v60, %v2627_v52  ;;  %v2987_v60 = vsub.s32 2, %v2965_v48 }
 0x618   :  { %v565_v63 = vsel %vm293_vm4, %v560_v61, 0 }
 0x619   :  { %2552 = vmatpush3.bf16.msra.mxu1 %v565_v63  ;;  %v509_v36 = vpack.c.bf16 %v507_v62, %v507_v62  ;;  %v2992_v62 = vsub.s32 3, %v2965_v48 }
 0x61a   :  { %2565 = vmatprep.subr.bf16.mxu1 %v2776_v8 }
 0x61b   :  { %2548 = vmatmul.mubr.msk.bf16.vlgmr.msra.gmra.mrb[12].mxu0 %vm263_vm3, %v509_v36  ;;  %v2997_v36 = vsub.s32 4, %v2965_v48 }
 0x61c   :  { %2561 = vmatprep.mubr.msk.bf16.mxu0 %vm2780_vm0, %v2776_v8  ;;  %2558 = vmatpush3.bf16.msra.mxu0 %v2614_v2  ;;  %v3007_v2 = vsub.s32 6, %v2965_v48 }
 0x61d   :  { %2559 = vmatprep.subr.bf16.mxu0 %v2776_v8 }
 0x61e   :  { %v2633_v39 = vpop.eup %2632  ;;  %3983 = vst [vmem:[#allocation6_spill] sm:$0xff] %v3007_v2 }
 0x61f   :  { %v508_v0 = vmul.f32 %v2633_v39, %v2629_v54 }
 0x620   :  { %2560 = vmatpush3.bf16.msra.mxu0 %v2615_v3 }
 0x621   :  { %v510_v1 = vpack.c.bf16 %v508_v0, %v508_v0  ;;  %v3002_v0 = vsub.s32 5, %v2965_v48 }
 0x623   :  { %2554 = vmatmul.mubr.msk.bf16.vlgmr.msra.gmra.mrb[16].mxu1 %vm263_vm3, %v510_v1 }
 0x624   :  { %2569 = vmatprep.mubr.msk.bf16.mxu1 %vm2780_vm0, %v2776_v8  ;;  %vm634_vm0 = vcmask 261120   ;;  %2566 = vmatpush3.bf16.msra.mxu1 %v2616_v21  ;;  %v2787_v21 = vmov 1966171168  }
 0x625   :  { %2567 = vmatprep.subr.bf16.mxu1 %v2776_v8 }
 0x628   :  { %2568 = vmatpush3.bf16.msra.mxu1 %v2617_v23  ;;  %v983_v23 = vunpack.c.l.s4 %v2787_v21 }
 0x6ee   :  { %v553_v4 = vpop.f32.mrb[12].mxu0 }
 0x6ef   :  { %v2549_v5 = vpop.f32.mrb[13].mxu0 }
 0x6f0   :  { %v556_v6 = vpop.f32.mrb[14].mxu0 }
 0x6f1   :  { %v2550_v7 = vpop.f32.mrb[15].mxu0 }
 0x6f6   :  { %v601_v9 = vpop.f32.mrb[16].mxu1 }
 0x6f7   :  { %v2604_v10 = vpack.i.bf16 %v601_v9, %v553_v4  ;;  %v2555_v11 = vpop.f32.mrb[17].mxu1  ;;  %v3012_v4 = vsub.s32 7, %v2965_v48 }
 0x6f8   :  { %v604_v12 = vpop.f32.mrb[18].mxu1 }
 0x6f9   :  { %v2556_v13 = vpop.f32.mrb[19].mxu1  ;;  %2605 = vrot.lane.b32.xlu1 %v2604_v10, %s2786_s12  ;;  %3984 = vst [vmem:[#allocation7_spill] sm:$0xff] %v3012_v4 }
 0x76b   :  { %v2606_v14 = vpop.permute.xlu1 %2605 }
 0x76c   :  { %v2608_v15 = vunpack.i.h.bf16 %v2606_v14  ;;  %v2607_v16 = vunpack.i.l.bf16 %v2606_v14 }
 0x76e   :  { %v616_v17 = vsel %vm165_vm2, %v2918_v28, %v2608_v15  ;;  %v615_v18 = vsel %vm165_vm2, %v2916_v24, %v2607_v16 }
 0x76f   :  { %v617_v20 = vpack.c.bf16 %v616_v17, %v615_v18 }
 0x771   :  { %2562 = vmatmul.mubr.msk.bf16.vlgmr.msra.gmra.mrb[16].mxu0 %vm634_vm0, %v617_v20 }
 0x844   :  { %v672_v25 = vpop.f32.mrb[16].mxu0 }
 0x845   :  { %v681_v26 = vmul.f32 0.044715, %v672_v25  ;;  %v2563_v27 = vpop.f32.mrb[17].mxu0  ;;  %v679_v42 = vmul.f32 0.5, %v672_v25 }
 0x846   :  { %v675_v24 = vpop.f32.mrb[18].mxu0 }
 0x847   :  { %v683_v28 = vmul.f32 %v681_v26, %v672_v25  ;;  %v682_v29 = vmul.f32 0.044715, %v675_v24  ;;  %v2564_v30 = vpop.f32.mrb[19].mxu0  ;;  %v680_v43 = vmul.f32 0.5, %v675_v24  ;;  %v984_v26 = vunpack.c.0.s8 %v983_v23 }
 0x849   :  { %v685_v31 = vmul.f32 %v683_v28, %v672_v25  ;;  %v684_v32 = vmul.f32 %v682_v29, %v675_v24 }
 0x84b   :  { %v687_v33 = vadd.f32 %v685_v31, %v672_v25  ;;  %v686_v34 = vmul.f32 %v684_v32, %v675_v24 }
 0x84d   :  { %v689_v35 = vmul.f32 0.7978846, %v687_v33  ;;  %v688_v37 = vadd.f32 %v686_v34, %v675_v24  ;;  %v3070_v24 = vsub.s32 %v984_v26, %v2965_v48 }
 0x84f   :  { %2634 = vtanh.f32 %v689_v35  ;;  %v690_v8 = vmul.f32 0.7978846, %v688_v37 }
 0x851   :  { %2636 = vtanh.f32 %v690_v8 }
 0x859   :  { %v2635_v38 = vpop.eup %2634 }
 0x85a   :  { %v693_v40 = vadd.f32 1.0, %v2635_v38 }
 0x85b   :  { %v2637_v41 = vpop.eup %2636 }
 0x85c   :  { %v694_v44 = vadd.f32 1.0, %v2637_v41  ;;  %v2957_v45 = vmul.f32 %v693_v40, %v679_v42 }
 0x85e   :  { %3980 = vst [vmem:[#allocation3_spill] sm:$0xff] %v2957_v45  ;;  %v2959_v46 = vmul.f32 %v694_v44, %v680_v43 }
 0x860   :  { %3981 = vst [vmem:[#allocation4_spill] sm:$0xff] %v2959_v46  ;;  %v697_v47 = vpack.c.bf16 %v2959_v46, %v2957_v45 }
 0x862   :  { %2570 = vmatmul.mubr.msk.bf16.vlgmr.msra.gmra.mrb[20].mxu1 %vm634_vm0, %v697_v47 }
 0x935   :  { %v758_v51 = vpop.f32.mrb[20].mxu1 }
 0x936   :  { %v2973_v52 = vadd.f32 %v2466_v49, %v758_v51  ;;  %v2571_v53 = vpop.f32.mrb[21].mxu1 }
 0x937   :  { %v761_v54 = vpop.f32.mrb[22].mxu1 }
 0x938   :  { %v2975_v55 = vadd.f32 %v2466_v49, %v761_v54  ;;  %v2572_v56 = vpop.f32.mrb[23].mxu1  ;;  %v765_v57 = vsel %vm165_vm2, %v2973_v52, -inf  ;;  %v790_v19 = vrot.slane %v2973_v52, %v2971_v50  ;;  %v802_v59 = vrot.slane %v2973_v52, %v2982_v58 }
 0x939   :  { %766 = vmax.xlane.f32.xlu0 %v765_v57  ;;  %v814_v61 = vrot.slane %v2973_v52, %v2987_v60  ;;  %v826_v63 = vrot.slane %v2973_v52, %v2992_v62  ;;  %v838_v39 = vrot.slane %v2973_v52, %v2997_v36  ;;  %v850_v1 = vrot.slane %v2973_v52, %v3002_v0 }
 0x93a   :  { %793 = vbcast.lane.b32.xlu1 %v790_v19, 272  ;;  %v862_v3 = vrot.slane %v2973_v52, %v3007_v2  ;;  %v874_v5 = vrot.slane %v2973_v52, %v3012_v4  ;;  %v886_v6 = vrot.slane %v2975_v55, %v2971_v50  ;;  %v898_v7 = vrot.slane %v2975_v55, %v2982_v58 }
 0x93b   :  { %v3022_v9 = vrot.slane %v2975_v55, %v2987_v60  ;;  %v768_v10 = vsel %vm165_vm2, %v2975_v55, -inf  ;;  %v3030_v11 = vrot.slane %v2975_v55, %v2992_v62  ;;  %v3035_v12 = vrot.slane %v2975_v55, %v2997_v36 }
 0x93c   :  { %v3040_v13 = vrot.slane %v2975_v55, %v3002_v0  ;;  %v3047_v15 = vrot.slane %v2975_v55, %v3007_v2  ;;  %v3054_v17 = vrot.slane %v2975_v55, %v3012_v4  ;;  %v988_v30 = vrot.slane %v2973_v52, %v3070_v24 }
 0x93d   :  { %v981_v47 = vcombine.high %v2973_v52, %v2973_v52 }
 0x93e   :  { %805 = vbcast.lane.b32.xlu1 %v802_v59, 272  ;;  %v1004_v33 = vrot.slane %v988_v30, %v3070_v24  ;;  %v996_v34 = vcombine.high %v988_v30, %v988_v30 }
 0x93f   :  { %v995_v57 = vrot.slane %v981_v47, %v3070_v24 }
 0x940   :  { %v3093_v8 = vrot.slane %v1004_v33, %v2971_v50  ;;  %v1018_v38 = vrot.slane %v996_v34, %v3070_v24  ;;  %v1026_v44 = vcombine.high %v1004_v33, %v1004_v33 }
 0x942   :  { %809 = vbcast.lane.b32.xlu1 %v802_v59, 280  ;;  %v3101_v43 = vrot.slane %v1018_v38, %v2971_v50  ;;  %v3111_v54 = vrot.slane %v1026_v44, %v2971_v50  ;;  %v1028_v56 = vcombine.high %v1018_v38, %v1018_v38 }
 0x946   :  { %821 = vbcast.lane.b32.xlu1 %v814_v61, 280 }
 0x94a   :  { %833 = vbcast.lane.b32.xlu1 %v826_v63, 280 }
 0x94e   :  { %845 = vbcast.lane.b32.xlu1 %v838_v39, 280 }
 0x94f   :  { %797 = vbcast.lane.b32.xlu0 %v790_v19, 280 }
 0x952   :  { %857 = vbcast.lane.b32.xlu1 %v850_v1, 280 }
 0x953   :  { %817 = vbcast.lane.b32.xlu0 %v814_v61, 272 }
 0x956   :  { %869 = vbcast.lane.b32.xlu1 %v862_v3, 280 }
 0x957   :  { %829 = vbcast.lane.b32.xlu0 %v826_v63, 272 }
 0x95a   :  { %881 = vbcast.lane.b32.xlu1 %v874_v5, 280 }
 0x95b   :  { %841 = vbcast.lane.b32.xlu0 %v838_v39, 272 }
 0x95e   :  { %1193 = vbcast.lane.b32.xlu1 %v790_v19, 288 }
 0x95f   :  { %853 = vbcast.lane.b32.xlu0 %v850_v1, 272 }
 0x962   :  { %1201 = vbcast.lane.b32.xlu1 %v802_v59, 288 }
 0x963   :  { %865 = vbcast.lane.b32.xlu0 %v862_v3, 272 }
 0x966   :  { %1209 = vbcast.lane.b32.xlu1 %v814_v61, 288 }
 0x967   :  { %877 = vbcast.lane.b32.xlu0 %v874_v5, 272 }
 0x96a   :  { %1217 = vbcast.lane.b32.xlu1 %v826_v63, 288 }
 0x96b   :  { %1197 = vbcast.lane.b32.xlu0 %v790_v19, 296 }
 0x96e   :  { %1225 = vbcast.lane.b32.xlu1 %v838_v39, 288 }
 0x96f   :  { %1205 = vbcast.lane.b32.xlu0 %v802_v59, 296 }
 0x972   :  { %1233 = vbcast.lane.b32.xlu1 %v850_v1, 288 }
 0x973   :  { %1213 = vbcast.lane.b32.xlu0 %v814_v61, 296 }
 0x976   :  { %1241 = vbcast.lane.b32.xlu1 %v862_v3, 288 }
 0x977   :  { %1221 = vbcast.lane.b32.xlu0 %v826_v63, 296  ;;  %v3120_v63 = vrot.slane %v1028_v56, %v2971_v50 }
 0x97a   :  { %1249 = vbcast.lane.b32.xlu1 %v874_v5, 288 }
 0x97b   :  { %1229 = vbcast.lane.b32.xlu0 %v838_v39, 296  ;;  %v1011_v39 = vrot.slane %v995_v57, %v3070_v24 }
 0x97d   :  { %v1027_v26 = vcombine.high %v1011_v39, %v1011_v39 }
 0x97f   :  { %1237 = vbcast.lane.b32.xlu0 %v850_v1, 296  ;;  %v997_v1 = vcombine.high %v995_v57, %v995_v57  ;;  %v3144_v38 = vrot.slane %v1027_v26, %v2971_v50 }
 0x983   :  { %1245 = vbcast.lane.b32.xlu0 %v862_v3, 296 }
 0x987   :  { %1253 = vbcast.lane.b32.xlu0 %v874_v5, 296 }
 0x98b   :  { %889 = vbcast.lane.b32.xlu0 %v886_v6, 272 }
 0x98f   :  { %901 = vbcast.lane.b32.xlu0 %v898_v7, 272 }
 0x993   :  { %913 = vbcast.lane.b32.xlu0 %v3022_v9, 272 }
 0x997   :  { %1261 = vbcast.lane.b32.xlu0 %v886_v6, 296 }
 0x99b   :  { %1269 = vbcast.lane.b32.xlu0 %v898_v7, 296 }
 0x99e   :  { %769 = vmax.xlane.f32.xlu1 %v768_v10 }
 0x99f   :  { %1277 = vbcast.lane.b32.xlu0 %v3022_v9, 296 }
 0x9a3   :  { %1285 = vbcast.lane.b32.xlu0 %v3030_v11, 296 }
 0x9a7   :  { %1293 = vbcast.lane.b32.xlu0 %v3035_v12, 296 }
 0x9ab   :  { %1301 = vbcast.lane.b32.xlu0 %v3040_v13, 296 }
 0x9ac   :  { %v3043_v14 = vpop.permute.xlu1 %793 }
 0x9af   :  { %1309 = vbcast.lane.b32.xlu0 %v3047_v15, 296  ;;  %893 = vbcast.lane.b32.xlu1 %v886_v6, 280 }
 0x9b0   :  { %v3050_v16 = vpop.permute.xlu1 %805 }
 0x9b3   :  { %1317 = vbcast.lane.b32.xlu0 %v3054_v17, 296  ;;  %905 = vbcast.lane.b32.xlu1 %v898_v7, 280 }
 0x9b4   :  { %v3057_v18 = vpop.permute.xlu1 %809 }
 0x9b7   :  { %925 = vbcast.lane.b32.xlu0 %v3030_v11, 272  ;;  %1257 = vbcast.lane.b32.xlu1 %v886_v6, 288 }
 0x9b8   :  { %v3060_v20 = vpop.permute.xlu1 %821 }
 0x9bb   :  { %937 = vbcast.lane.b32.xlu0 %v3035_v12, 272  ;;  %1265 = vbcast.lane.b32.xlu1 %v898_v7, 288  ;;  %v3129_v7 = vrot.slane %v1011_v39, %v2971_v50 }
 0x9bc   :  { %v3063_v25 = vpop.permute.xlu1 %833 }
 0x9bf   :  { %949 = vbcast.lane.b32.xlu0 %v3040_v13, 272  ;;  %1273 = vbcast.lane.b32.xlu1 %v3022_v9, 288 }
 0x9c0   :  { %v3067_v27 = vpop.permute.xlu1 %845 }
 0x9c3   :  { %961 = vbcast.lane.b32.xlu0 %v3047_v15, 272  ;;  %1281 = vbcast.lane.b32.xlu1 %v3030_v11, 288 }
 0x9c4   :  { %v3074_v28 = vpop.permute.xlu1 %857 }
 0x9c6   :  { %v3076_v29 = vpop.xlane.xlu0 %766 }
 0x9c7   :  { %973 = vbcast.lane.b32.xlu0 %v3054_v17, 272  ;;  %1289 = vbcast.lane.b32.xlu1 %v3035_v12, 288 }
 0x9c8   :  { %v3082_v31 = vpop.permute.xlu1 %869 }
 0x9ca   :  { %v3084_v32 = vpop.permute.xlu0 %797 }
 0x9cb   :  { %1297 = vbcast.lane.b32.xlu1 %v3040_v13, 288 }
 0x9cc   :  { %v3088_v35 = vpop.permute.xlu1 %881 }
 0x9ce   :  { %v3090_v37 = vpop.permute.xlu0 %817 }
 0x9cf   :  { %1305 = vbcast.lane.b32.xlu1 %v3047_v15, 288 }
 0x9d0   :  { %v1194_v40 = vpop.permute.xlu1 %1193 }
 0x9d1   :  { %v1319_v41 = vmul.f32 %v1194_v40, %v3093_v8 }
 0x9d2   :  { %v3098_v42 = vpop.permute.xlu0 %829 }
 0x9d3   :  { %1383 = vrot.lane.b32.xlu0 %v1319_v41, %s2784_s6  ;;  %1313 = vbcast.lane.b32.xlu1 %v3054_v17, 288 }
 0x9d4   :  { %v1202_v49 = vpop.permute.xlu1 %1201 }
 0x9d5   :  { %v1321_v51 = vmul.f32 %v1202_v49, %v3101_v43 }
 0x9d6   :  { %v3108_v53 = vpop.permute.xlu0 %841 }
 0x9d7   :  { %1387 = vrot.lane.b32.xlu0 %v1321_v51, %s2784_s6  ;;  %917 = vbcast.lane.b32.xlu1 %v3022_v9, 280  ;;  %v1025_v9 = vrot.slane %v997_v1, %v3070_v24 }
 0x9d8   :  { %v1210_v19 = vpop.permute.xlu1 %1209 }
 0x9d9   :  { %v1323_v59 = vmul.f32 %v1210_v19, %v3111_v54 }
 0x9da   :  { %v3117_v61 = vpop.permute.xlu0 %853 }
 0x9db   :  { %1391 = vrot.lane.b32.xlu0 %v1323_v59, %s2784_s6  ;;  %929 = vbcast.lane.b32.xlu1 %v3030_v11, 280  ;;  %v3138_v11 = vrot.slane %v1025_v9, %v2971_v50 }
 0x9dc   :  { %v1218_v3 = vpop.permute.xlu1 %1217 }
 0x9dd   :  { %v1325_v5 = vmul.f32 %v1218_v3, %v3120_v63 }
 0x9de   :  { %v3126_v6 = vpop.permute.xlu0 %865 }
 0x9df   :  { %1395 = vrot.lane.b32.xlu0 %v1325_v5, %s2784_s6  ;;  %941 = vbcast.lane.b32.xlu1 %v3035_v12, 280  ;;  %v1029_v12 = vcombine.high %v1025_v9, %v1025_v9 }
 0x9e0   :  { %v1226_v10 = vpop.permute.xlu1 %1225 }
 0x9e1   :  { %v1327_v21 = vmul.f32 %v1226_v10, %v3129_v7  ;;  %v3150_v47 = vrot.slane %v1029_v12, %v2971_v50 }
 0x9e2   :  { %v3135_v23 = vpop.permute.xlu0 %877 }
 0x9e3   :  { %1399 = vrot.lane.b32.xlu0 %v1327_v21, %s2784_s6  ;;  %953 = vbcast.lane.b32.xlu1 %v3040_v13, 280 }
 0x9e4   :  { %v1234_v30 = vpop.permute.xlu1 %1233 }
 0x9e5   :  { %v1329_v33 = vmul.f32 %v1234_v30, %v3138_v11  ;;  %v1037_v30 = vrot.slane %v2975_v55, %v3070_v24 }
 0x9e6   :  { %v1198_v34 = vpop.permute.xlu0 %1197 }
 0x9e7   :  { %1403 = vrot.lane.b32.xlu0 %v1329_v33, %s2784_s6  ;;  %965 = vbcast.lane.b32.xlu1 %v3047_v15, 280  ;;  %v1320_v49 = vmul.f32 %v1198_v34, %v3093_v8  ;;  %v1053_v34 = vrot.slane %v1037_v30, %v3070_v24  ;;  %v1045_v12 = vcombine.high %v1037_v30, %v1037_v30 }
 0x9e8   :  { %v1242_v40 = vpop.permute.xlu1 %1241 }
 0x9e9   :  { %v1331_v41 = vmul.f32 %v1242_v40, %v3144_v38 }
 0x9ea   :  { %v1206_v44 = vpop.permute.xlu0 %1205 }
 0x9eb   :  { %1407 = vrot.lane.b32.xlu0 %v1331_v41, %s2784_s6  ;;  %977 = vbcast.lane.b32.xlu1 %v3054_v17, 280  ;;  %v1322_v15 = vmul.f32 %v1206_v44, %v3101_v43  ;;  %v3182_v41 = vrot.slane %v1053_v34, %v2971_v50  ;;  %v1067_v44 = vrot.slane %v1045_v12, %v3070_v24 }
 0x9ec   :  { %v1250_v13 = vpop.permute.xlu1 %1249 }
 0x9ed   :  { %v1333_v51 = vmul.f32 %v1250_v13, %v3150_v47 }
 0x9ee   :  { %v1214_v56 = vpop.permute.xlu0 %1213 }
 0x9ef   :  { %1411 = vrot.lane.b32.xlu0 %v1333_v51, %s2784_s6  ;;  %1385 = vrot.lane.b32.xlu1 %v1320_v49, %s2784_s6  ;;  %v1324_v19 = vmul.f32 %v1214_v56, %v3111_v54  ;;  %v3187_v51 = vrot.slane %v1067_v44, %v2971_v50  ;;  %v1075_v56 = vcombine.high %v1053_v34, %v1053_v34 }
 0x9f2   :  { %v1222_v57 = vpop.permute.xlu0 %1221 }
 0x9f3   :  { %1389 = vrot.lane.b32.xlu1 %v1322_v15, %s2784_s6  ;;  %v1326_v17 = vmul.f32 %v1222_v57, %v3120_v63  ;;  %v1030_v15 = vcombine.high %v2975_v55, %v2975_v55 }
 0x9f6   :  { %v1230_v59 = vpop.permute.xlu0 %1229 }
 0x9f7   :  { %1393 = vrot.lane.b32.xlu1 %v1324_v19, %s2784_s6  ;;  %v1328_v1 = vmul.f32 %v1230_v59, %v3129_v7  ;;  %v3194_v59 = vrot.slane %v1075_v56, %v2971_v50 }
 0x9fa   :  { %v1238_v39 = vpop.permute.xlu0 %1237 }
 0x9fb   :  { %1397 = vrot.lane.b32.xlu1 %v1326_v17, %s2784_s6  ;;  %v1330_v5 = vmul.f32 %v1238_v39, %v3138_v11  ;;  %v1077_v17 = vcombine.high %v1067_v44, %v1067_v44  ;;  %v1044_v39 = vrot.slane %v1030_v15, %v3070_v24 }
 0x9fe   :  { %v1246_v3 = vpop.permute.xlu0 %1245 }
 0x9ff   :  { %1401 = vrot.lane.b32.xlu1 %v1328_v1, %s2784_s6  ;;  %v1332_v10 = vmul.f32 %v1246_v3, %v3144_v38 }
 0xa02   :  { %v1254_v9 = vpop.permute.xlu0 %1253 }
 0xa03   :  { %1405 = vrot.lane.b32.xlu1 %v1330_v5, %s2784_s6  ;;  %v1334_v26 = vmul.f32 %v1254_v9, %v3150_v47  ;;  %v3201_v5 = vrot.slane %v1077_v17, %v2971_v50  ;;  %v1060_v9 = vrot.slane %v1044_v39, %v3070_v24 }
 0xa05   :  { %v3207_v34 = vrot.slane %v1060_v9, %v2971_v50  ;;  %v1076_v56 = vcombine.high %v1060_v9, %v1060_v9 }
 0xa06   :  { %v3169_v21 = vpop.permute.xlu0 %889 }
 0xa07   :  { %1409 = vrot.lane.b32.xlu1 %v1332_v10, %s2784_s6  ;;  %v1046_v10 = vcombine.high %v1044_v39, %v1044_v39 }
 0xa09   :  { %v1074_v12 = vrot.slane %v1046_v10, %v3070_v24 }
 0xa0a   :  { %v3175_v33 = vpop.permute.xlu0 %901 }
 0xa0b   :  { %1413 = vrot.lane.b32.xlu1 %v1334_v26, %s2784_s6  ;;  %v1078_v17 = vcombine.high %v1074_v12, %v1074_v12 }
 0xa0e   :  { %v3179_v40 = vpop.permute.xlu0 %913 }
 0xa12   :  { %v1262_v13 = vpop.permute.xlu0 %1261 }
 0xa13   :  { %v1336_v49 = vmul.f32 %v1262_v13, %v3182_v41 }
 0xa15   :  { %1417 = vrot.lane.b32.xlu1 %v1336_v49, %s2784_s6  ;;  %v3213_v49 = vrot.slane %v1074_v12, %v2971_v50 }
 0xa16   :  { %v1270_v57 = vpop.permute.xlu0 %1269 }
 0xa17   :  { %v1338_v19 = vmul.f32 %v1270_v57, %v3187_v51 }
 0xa19   :  { %1421 = vrot.lane.b32.xlu1 %v1338_v19, %s2784_s6  ;;  %v3218_v19 = vrot.slane %v1076_v56, %v2971_v50 }
 0xa1a   :  { %v1278_v1 = vpop.permute.xlu0 %1277 }
 0xa1b   :  { %v1340_v3 = vmul.f32 %v1278_v1, %v3194_v59 }
 0xa1d   :  { %1425 = vrot.lane.b32.xlu1 %v1340_v3, %s2784_s6  ;;  %v3223_v3 = vrot.slane %v1078_v17, %v2971_v50 }
 0xa1e   :  { %v1286_v26 = vpop.permute.xlu0 %1285 }
 0xa1f   :  { %v1342_v30 = vmul.f32 %v1286_v26, %v3201_v5 }
 0xa21   :  { %1429 = vrot.lane.b32.xlu1 %v1342_v30, %s2784_s6 }
 0xa22   :  { %v1294_v44 = vpop.permute.xlu0 %1293 }
 0xa23   :  { %v1344_v13 = vmul.f32 %v1294_v44, %v3207_v34 }
 0xa25   :  { %1433 = vrot.lane.b32.xlu1 %v1344_v13, %s2784_s6 }
 0xa26   :  { %v1302_v15 = vpop.permute.xlu0 %1301 }
 0xa27   :  { %v1346_v57 = vmul.f32 %v1302_v15, %v3213_v49 }
 0xa29   :  { %1437 = vrot.lane.b32.xlu1 %v1346_v57, %s2784_s6 }
 0xa2a   :  { %v1310_v39 = vpop.permute.xlu0 %1309 }
 0xa2b   :  { %v1348_v24 = vmul.f32 %v1310_v39, %v3218_v19  ;;  %v770_v1 = vpop.xlane.xlu1 %769 }
 0xa2d   :  { %1441 = vrot.lane.b32.xlu1 %v1348_v24, %s2784_s6 }
 0xa2e   :  { %v1318_v10 = vpop.permute.xlu0 %1317 }
 0xa2f   :  { %v1350_v9 = vmul.f32 %v1318_v10, %v3223_v3  ;;  %v3226_v26 = vpop.permute.xlu1 %893 }
 0xa31   :  { %1445 = vrot.lane.b32.xlu1 %v1350_v9, %s2784_s6 }
 0xa33   :  { %v3229_v30 = vpop.permute.xlu1 %905 }
 0xa37   :  { %v1258_v44 = vpop.permute.xlu1 %1257 }
 0xa38   :  { %v1335_v12 = vmul.f32 %v1258_v44, %v3182_v41 }
 0xa3a   :  { %1415 = vrot.lane.b32.xlu0 %v1335_v12, %s2784_s6 }
 0xa3b   :  { %v1266_v13 = vpop.permute.xlu1 %1265 }
 0xa3c   :  { %v1337_v56 = vmul.f32 %v1266_v13, %v3187_v51 }
 0xa3e   :  { %1419 = vrot.lane.b32.xlu0 %v1337_v56, %s2784_s6 }
 0xa3f   :  { %v1274_v15 = vpop.permute.xlu1 %1273 }
 0xa40   :  { %v1339_v57 = vmul.f32 %v1274_v15, %v3194_v59 }
 0xa42   :  { %1423 = vrot.lane.b32.xlu0 %v1339_v57, %s2784_s6 }
 0xa43   :  { %v1282_v17 = vpop.permute.xlu1 %1281 }
 0xa44   :  { %v1341_v39 = vmul.f32 %v1282_v17, %v3201_v5 }
 0xa46   :  { %1427 = vrot.lane.b32.xlu0 %v1341_v39, %s2784_s6  ;;  %v3251_v39 = vpop.permute.xlu0 %925 }
 0xa47   :  { %v1290_v24 = vpop.permute.xlu1 %1289 }
 0xa48   :  { %v1343_v10 = vmul.f32 %v1290_v24, %v3207_v34  ;;  %v771_v24 = vsub.f32 %v2973_v52, %v3076_v29  ;;  %v1160_v52 = vmul.f32 %v3093_v8, %v3084_v32  ;;  %v1164_v32 = vmul.f32 %v3111_v54, %v3060_v20 }
 0xa49   :  { %v1168_v20 = vmul.f32 %v3129_v7, %v3067_v27 }
 0xa4a   :  { %1431 = vrot.lane.b32.xlu0 %v1343_v10, %s2784_s6 }
 0xa4b   :  { %v1298_v9 = vpop.permute.xlu1 %1297 }
 0xa4c   :  { %v1345_v44 = vmul.f32 %v1298_v9, %v3213_v49  ;;  %v773_v9 = vmul.f32 1.442695, %v771_v24 }
 0xa4e   :  { %1435 = vrot.lane.b32.xlu0 %v1345_v44, %s2784_s6  ;;  %v772_v44 = vsub.f32 %v2975_v55, %v770_v1  ;;  %2638 = vpow2.f32 %v773_v9  ;;  %v1162_v9 = vmul.f32 %v3101_v43, %v3057_v18 }
 0xa4f   :  { %v1306_v12 = vpop.permute.xlu1 %1305 }
 0xa50   :  { %v1347_v13 = vmul.f32 %v1306_v12, %v3218_v19 }
 0xa52   :  { %1439 = vrot.lane.b32.xlu0 %v1347_v13, %s2784_s6  ;;  %v3260_v13 = vpop.permute.xlu0 %937 }
 0xa53   :  { %v1314_v56 = vpop.permute.xlu1 %1313 }
 0xa54   :  { %v1349_v15 = vmul.f32 %v1314_v56, %v3223_v3  ;;  %v775_v56 = vmul.f32 1.442695, %v772_v44 }
 0xa56   :  { %1443 = vrot.lane.b32.xlu0 %v1349_v15, %s2784_s6  ;;  %v3264_v46 = vpop.permute.xlu0 %949  ;;  %2640 = vpow2.f32 %v775_v56 }
 0xa57   :  { %v3247_v57 = vpop.permute.xlu1 %917 }
 0xa58   :  { %v3272_v1 = vpop.eup %2638 }
 0xa59   :  { %v777_v56 = vsel %vm165_vm2, %v3272_v1, 0.0 }
 0xa5a   :  { %v3270_v24 = vpop.permute.xlu0 %961 }
 0xa5b   :  { %v3249_v17 = vpop.permute.xlu1 %929 }
 0xa5e   :  { %v3283_v22 = vpop.permute.xlu0 %973 }
 0xa5f   :  { %v3255_v10 = vpop.permute.xlu1 %941 }
 0xa60   :  { %v3279_v48 = vpop.eup %2640 }
 0xa61   :  { %v780_v18 = vsel %vm165_vm2, %v3279_v48, 0.0 }
 0xa63   :  { %v3258_v12 = vpop.permute.xlu1 %953 }
 0xa67   :  { %v3262_v15 = vpop.permute.xlu1 %965 }
 0xa6b   :  { %v3266_v45 = vpop.permute.xlu1 %977 }
 0xa6f   :  { %v1386_v29 = vpop.permute.xlu1 %1385 }
 0xa70   :  { %v1480_v55 = vadd.f32 %v1386_v29, %v1160_v52 }
 0xa72   :  { %1554 = vrot.lane.b32.xlu1 %v1480_v55, %s2783_s30  ;;  %v1166_v55 = vmul.f32 %v3120_v63, %v3063_v25 }
 0xa73   :  { %v1390_v44 = vpop.permute.xlu1 %1389 }
 0xa74   :  { %v1482_v4 = vadd.f32 %v1390_v44, %v1162_v9  ;;  %v1384_v44 = vpop.permute.xlu0 %1383 }
 0xa75   :  { %778 = vadd.xlane.f32.xlu0 %v777_v56 }
 0xa76   :  { %1558 = vrot.lane.b32.xlu1 %v1482_v4, %s2783_s30 }
 0xa77   :  { %v1394_v52 = vpop.permute.xlu1 %1393 }
 0xa78   :  { %v1484_v29 = vadd.f32 %v1394_v52, %v1164_v32  ;;  %v1170_v32 = vmul.f32 %v3138_v11, %v3074_v28  ;;  %v1388_v52 = vpop.permute.xlu0 %1387  ;;  %v1159_v28 = vmul.f32 %v3093_v8, %v3043_v14  ;;  %v1178_v14 = vmul.f32 %v3187_v51, %v3229_v30 }
 0xa79   :  { %781 = vadd.xlane.f32.xlu0 %v780_v18  ;;  %v1163_v8 = vmul.f32 %v3111_v54, %v3090_v37  ;;  %v1182_v54 = vmul.f32 %v3201_v5, %v3249_v17 }
 0xa7a   :  { %1562 = vrot.lane.b32.xlu1 %v1484_v29, %s2783_s30  ;;  %v1172_v29 = vmul.f32 %v3144_v38, %v3082_v31 }
 0xa7b   :  { %v1398_v9 = vpop.permute.xlu1 %1397 }
 0xa7c   :  { %v1486_v56 = vadd.f32 %v1398_v9, %v1166_v55  ;;  %v1392_v9 = vpop.permute.xlu0 %1391 }
 0xa7e   :  { %1566 = vrot.lane.b32.xlu1 %v1486_v56, %s2783_s30  ;;  %v1174_v56 = vmul.f32 %v3150_v47, %v3088_v35 }
 0xa7f   :  { %v1402_v4 = vpop.permute.xlu1 %1401 }
 0xa80   :  { %v1488_v2 = vadd.f32 %v1402_v4, %v1168_v20  ;;  %v1479_v4 = vadd.f32 %v1384_v44, %v1159_v28  ;;  %v1396_v31 = vpop.permute.xlu0 %1395 }
 0xa82   :  { %1570 = vrot.lane.b32.xlu1 %v1488_v2, %s2783_s30 }
 0xa83   :  { %v1406_v18 = vpop.permute.xlu1 %1405 }
 0xa84   :  { %v1490_v25 = vadd.f32 %v1406_v18, %v1170_v32  ;;  %v1176_v32 = vmul.f32 %v3182_v41, %v3226_v26  ;;  %v1161_v18 = vmul.f32 %v3101_v43, %v3050_v16  ;;  %v1400_v44 = vpop.permute.xlu0 %1399  ;;  %v1180_v16 = vmul.f32 %v3194_v59, %v3247_v57 }
 0xa85   :  { %v1165_v43 = vmul.f32 %v3120_v63, %v3098_v42  ;;  %v1184_v42 = vmul.f32 %v3207_v34, %v3255_v10  ;;  %v1169_v63 = vmul.f32 %v3138_v11, %v3117_v61  ;;  %v1188_v11 = vmul.f32 %v3218_v19, %v3262_v15 }
 0xa86   :  { %1574 = vrot.lane.b32.xlu1 %v1490_v25, %s2783_s30 }
 0xa87   :  { %v1410_v55 = vpop.permute.xlu1 %1409 }
 0xa88   :  { %v1492_v27 = vadd.f32 %v1410_v55, %v1172_v29  ;;  %v1481_v29 = vadd.f32 %v1388_v52, %v1161_v18  ;;  %v1404_v37 = vpop.permute.xlu0 %1403 }
 0xa8a   :  { %1578 = vrot.lane.b32.xlu1 %v1492_v27, %s2783_s30  ;;  %v1483_v27 = vadd.f32 %v1392_v9, %v1163_v8  ;;  %v1167_v9 = vmul.f32 %v3129_v7, %v3108_v53  ;;  %v1186_v53 = vmul.f32 %v3213_v49, %v3258_v12  ;;  %v1171_v7 = vmul.f32 %v3144_v38, %v3126_v6 }
 0xa8b   :  { %v1414_v20 = vpop.permute.xlu1 %1413  ;;  %v1190_v6 = vmul.f32 %v3223_v3, %v3266_v45  ;;  %v1175_v38 = vmul.f32 %v3182_v41, %v3169_v21 }
 0xa8c   :  { %v1494_v2 = vadd.f32 %v1414_v20, %v1174_v56  ;;  %v1485_v56 = vadd.f32 %v1396_v31, %v1165_v43  ;;  %v1487_v20 = vadd.f32 %v1400_v44, %v1167_v9  ;;  %v1179_v44 = vmul.f32 %v3194_v59, %v3179_v40 }
 0xa8d   :  { %v1185_v40 = vmul.f32 %v3213_v49, %v3264_v46 }
 0xa8e   :  { %1582 = vrot.lane.b32.xlu1 %v1494_v2, %s2783_s30  ;;  %v1408_v2 = vpop.permute.xlu0 %1407 }
 0xa8f   :  { %1552 = vrot.lane.b32.xlu0 %v1479_v4, %s2783_s30  ;;  %v1418_v35 = vpop.permute.xlu1 %1417  ;;  %v1491_v18 = vadd.f32 %v1408_v2, %v1171_v7 }
 0xa90   :  { %v1496_v25 = vadd.f32 %v1418_v35, %v1176_v32  ;;  %v1489_v32 = vadd.f32 %v1404_v37, %v1169_v63  ;;  %v1173_v35 = vmul.f32 %v3150_v47, %v3135_v23  ;;  %v1177_v23 = vmul.f32 %v3187_v51, %v3175_v33 }
 0xa91   :  { %v1183_v33 = vmul.f32 %v3207_v34, %v3260_v13  ;;  %v1189_v34 = vmul.f32 %v3223_v3, %v3283_v22 }
 0xa92   :  { %1586 = vrot.lane.b32.xlu1 %v1496_v25, %s2783_s30  ;;  %v1412_v61 = vpop.permute.xlu0 %1411 }
 0xa93   :  { %1556 = vrot.lane.b32.xlu0 %v1481_v29, %s2783_s30  ;;  %v1422_v26 = vpop.permute.xlu1 %1421  ;;  %v1493_v29 = vadd.f32 %v1412_v61, %v1173_v35  ;;  %v3986_v61 = vld [vmem:[#allocation2_spill] sm:$0xff] }
 0xa94   :  { %v1498_v55 = vadd.f32 %v1422_v26, %v1178_v14 }
 0xa96   :  { %1590 = vrot.lane.b32.xlu1 %v1498_v55, %s2783_s30  ;;  %v1181_v55 = vmul.f32 %v3201_v5, %v3251_v39  ;;  %v1187_v5 = vmul.f32 %v3218_v19, %v3270_v24 }
 0xa97   :  { %1560 = vrot.lane.b32.xlu0 %v1483_v27, %s2783_s30  ;;  %v1426_v30 = vpop.permute.xlu1 %1425 }
 0xa98   :  { %v1500_v52 = vadd.f32 %v1426_v30, %v1180_v16 }
 0xa9a   :  { %1594 = vrot.lane.b32.xlu1 %v1500_v52, %s2783_s30 }
 0xa9b   :  { %1564 = vrot.lane.b32.xlu0 %v1485_v56, %s2783_s30  ;;  %v1430_v57 = vpop.permute.xlu1 %1429 }
 0xa9c   :  { %v1502_v28 = vadd.f32 %v1430_v57, %v1182_v54 }
 0xa9e   :  { %1598 = vrot.lane.b32.xlu1 %v1502_v28, %s2783_s30 }
 0xa9f   :  { %1568 = vrot.lane.b32.xlu0 %v1487_v20, %s2783_s30  ;;  %v1434_v17 = vpop.permute.xlu1 %1433  ;;  %v3985_v20 = vld [vmem:[#allocation6_spill] sm:$0xff] }
 0xaa0   :  { %v1504_v4 = vadd.f32 %v1434_v17, %v1184_v42 }
 0xaa2   :  { %1602 = vrot.lane.b32.xlu1 %v1504_v4, %s2783_s30 }
 0xaa3   :  { %1572 = vrot.lane.b32.xlu0 %v1489_v32, %s2783_s30  ;;  %v1438_v10 = vpop.permute.xlu1 %1437 }
 0xaa4   :  { %v1506_v31 = vadd.f32 %v1438_v10, %v1186_v53 }
 0xaa6   :  { %1606 = vrot.lane.b32.xlu1 %v1506_v31, %s2783_s30 }
 0xaa7   :  { %1576 = vrot.lane.b32.xlu0 %v1491_v18, %s2783_s30  ;;  %v1442_v12 = vpop.permute.xlu1 %1441 }
 0xaa8   :  { %v1508_v25 = vadd.f32 %v1442_v12, %v1188_v11 }
 0xaaa   :  { %1610 = vrot.lane.b32.xlu1 %v1508_v25, %s2783_s30 }
 0xaab   :  { %1580 = vrot.lane.b32.xlu0 %v1493_v29, %s2783_s30  ;;  %v1446_v15 = vpop.permute.xlu1 %1445 }
 0xaac   :  { %v1510_v14 = vadd.f32 %v1446_v15, %v1190_v6  ;;  %v1416_v8 = vpop.permute.xlu0 %1415 }
 0xaad   :  { %v1495_v26 = vadd.f32 %v1416_v8, %v1175_v38 }
 0xaae   :  { %1614 = vrot.lane.b32.xlu1 %v1510_v14, %s2783_s30 }
 0xaaf   :  { %1584 = vrot.lane.b32.xlu0 %v1495_v26, %s2783_s30 }
 0xab0   :  { %v1420_v47 = vpop.permute.xlu0 %1419 }
 0xab1   :  { %v1497_v45 = vadd.f32 %v1420_v47, %v1177_v23 }
 0xab3   :  { %1588 = vrot.lane.b32.xlu0 %v1497_v45, %s2783_s30 }
 0xab4   :  { %v1424_v21 = vpop.permute.xlu0 %1423 }
 0xab5   :  { %v1499_v41 = vadd.f32 %v1424_v21, %v1179_v44 }
 0xab7   :  { %1592 = vrot.lane.b32.xlu0 %v1499_v41, %s2783_s30 }
 0xab8   :  { %v1428_v27 = vpop.permute.xlu0 %1427 }
 0xab9   :  { %v1501_v16 = vadd.f32 %v1428_v27, %v1181_v55 }
 0xabb   :  { %1596 = vrot.lane.b32.xlu0 %v1501_v16, %s2783_s30 }
 0xabc   :  { %v1432_v51 = vpop.permute.xlu0 %1431 }
 0xabd   :  { %v1503_v43 = vadd.f32 %v1432_v51, %v1183_v33 }
 0xabf   :  { %1600 = vrot.lane.b32.xlu0 %v1503_v43, %s2783_s30 }
 0xac0   :  { %v1436_v59 = vpop.permute.xlu0 %1435 }
 0xac1   :  { %v1505_v30 = vadd.f32 %v1436_v59, %v1185_v40 }
 0xac3   :  { %1604 = vrot.lane.b32.xlu0 %v1505_v30, %s2783_s30 }
 0xac4   :  { %v1440_v39 = vpop.permute.xlu0 %1439 }
 0xac5   :  { %v1507_v52 = vadd.f32 %v1440_v39, %v1187_v5 }
 0xac7   :  { %1608 = vrot.lane.b32.xlu0 %v1507_v52, %s2783_s30 }
 0xac8   :  { %v1444_v13 = vpop.permute.xlu0 %1443 }
 0xac9   :  { %v1509_v56 = vadd.f32 %v1444_v13, %v1189_v34 }
 0xacb   :  { %1612 = vrot.lane.b32.xlu0 %v1509_v56, %s2783_s30 }
 0xae4   :  { %v1555_v4 = vpop.permute.xlu1 %1554 }
 0xb02   :  { %v779_v46 = vpop.xlane.xlu0 %778 }
 0xb03   :  { %2642 = vrcp.f32 %v779_v46 }
 0xb06   :  { %v782_v24 = vpop.xlane.xlu0 %781 }
 0xb07   :  { %2644 = vrcp.f32 %v782_v24 }
 0xb0a   :  { %v1553_v32 = vpop.permute.xlu0 %1552 }
 0xb0d   :  { %v2643_v49 = vpop.eup %2642 }
 0xb0e   :  { %v3377_v37 = vmul.f32 %v2643_v49, %v3272_v1  ;;  %v1557_v53 = vpop.permute.xlu0 %1556 }
 0xb10   :  { %v2035_v19 = vrot.slane %v3377_v37, %v2971_v50  ;;  %v2057_v22 = vrot.slane %v3377_v37, %v2987_v60  ;;  %v2046_v3 = vrot.slane %v3377_v37, %v2982_v58  ;;  %v2068_v54 = vrot.slane %v3377_v37, %v2992_v62 }
 0xb11   :  { %v2079_v1 = vrot.slane %v3377_v37, %v2997_v36  ;;  %v2090_v9 = vrot.slane %v3377_v37, %v3002_v0  ;;  %v2645_v57 = vpop.eup %2644  ;;  %v2101_v42 = vrot.slane %v3377_v37, %v3985_v20 }
 0xb12   :  { %2041 = vbcast.lane.b32.xlu0 %v2035_v19, 264  ;;  %2037 = vbcast.lane.b32.xlu1 %v2035_v19, 256  ;;  %v3392_v28 = vmul.f32 %v2645_v57, %v3279_v48 }
 0xb14   :  { %v2123_v63 = vrot.slane %v3392_v28, %v2971_v50  ;;  %v2134_v17 = vrot.slane %v3392_v28, %v2982_v58  ;;  %v2145_v2 = vrot.slane %v3392_v28, %v2987_v60  ;;  %v2156_v48 = vrot.slane %v3392_v28, %v2992_v62  ;;  %v1559_v62 = vpop.permute.xlu1 %1558 }
 0xb15   :  { %v2167_v50 = vrot.slane %v3392_v28, %v2997_v36  ;;  %v2178_v58 = vrot.slane %v3392_v28, %v3002_v0  ;;  %v2189_v60 = vrot.slane %v3392_v28, %v3985_v20  ;;  %v1561_v36 = vpop.permute.xlu0 %1560  ;;  %v3987_v0 = vld [vmem:[#allocation5_spill] sm:$0xff] }
 0xb16   :  { %2059 = vbcast.lane.b32.xlu0 %v2057_v22, 256  ;;  %2048 = vbcast.lane.b32.xlu1 %v2046_v3, 256  ;;  %vm3412_vm5 = vcmp.eq.s32.totalorder %v3987_v0, %v3986_v61  ;;  %v1513_v29 = vadd.s32 8, %v3987_v0 }
 0xb17   :  { %v3418_v12 = vsel %vm3412_vm5, -1e+09, %v1553_v32  ;;  %v3425_v38 = vsel %vm3412_vm5, -1e+09, %v1557_v53  ;;  %v3458_v33 = vsel %vm3412_vm5, -1e+09, %v1561_v36 }
 0xb18   :  { %v1563_v7 = vpop.permute.xlu1 %1562  ;;  %v1680_v6 = vsel %vm165_vm2, %v3418_v12, -inf  ;;  %vm3428_vm6 = vcmp.eq.s32.totalorder %v1513_v29, %v3986_v61  ;;  %v1686_v26 = vsel %vm165_vm2, %v3425_v38, -inf  ;;  %v1692_v30 = vsel %vm165_vm2, %v3458_v33, -inf }
 0xb19   :  { %v1565_v31 = vpop.permute.xlu0 %1564  ;;  %v3436_v23 = vsel %vm3428_vm6, -1e+09, %v1559_v62  ;;  %v3442_v44 = vsel %vm3428_vm6, -1e+09, %v1563_v7  ;;  %v3446_v21 = vsel %vm3428_vm6, -1e+09, %v1555_v4 }
 0xb1a   :  { %2070 = vbcast.lane.b32.xlu0 %v2068_v54, 256  ;;  %2052 = vbcast.lane.b32.xlu1 %v2046_v3, 264  ;;  %v1689_v45 = vsel %vm165_vm2, %v3436_v23, -inf  ;;  %v1695_v55 = vsel %vm165_vm2, %v3442_v44, -inf  ;;  %v1683_v16 = vsel %vm165_vm2, %v3446_v21, -inf }
 0xb1b   :  { %v3470_v5 = vsel %vm3412_vm5, -1e+09, %v1565_v31 }
 0xb1c   :  { %v1567_v10 = vpop.permute.xlu1 %1566  ;;  %v1698_v13 = vsel %vm165_vm2, %v3470_v5, -inf }
 0xb1d   :  { %v1569_v35 = vpop.permute.xlu0 %1568  ;;  %v3452_v27 = vsel %vm3428_vm6, -1e+09, %v1567_v10 }
 0xb1e   :  { %2081 = vbcast.lane.b32.xlu0 %v2079_v1, 256  ;;  %2063 = vbcast.lane.b32.xlu1 %v2057_v22, 264  ;;  %v1701_v40 = vsel %vm165_vm2, %v3452_v27, -inf  ;;  %v3482_v46 = vsel %vm3412_vm5, -1e+09, %v1569_v35 }
 0xb1f   :  { %v1704_v24 = vsel %vm165_vm2, %v3482_v46, -inf }
 0xb20   :  { %v1571_v18 = vpop.permute.xlu1 %1570 }
 0xb21   :  { %v1573_v15 = vpop.permute.xlu0 %1572  ;;  %v3464_v59 = vsel %vm3428_vm6, -1e+09, %v1571_v18 }
 0xb22   :  { %2092 = vbcast.lane.b32.xlu0 %v2090_v9, 256  ;;  %2074 = vbcast.lane.b32.xlu1 %v2068_v54, 264  ;;  %v1707_v52 = vsel %vm165_vm2, %v3464_v59, -inf  ;;  %v3494_v22 = vsel %vm3412_vm5, -1e+09, %v1573_v15 }
 0xb23   :  { %v1710_v57 = vsel %vm165_vm2, %v3494_v22, -inf }
 0xb24   :  { %v1575_v25 = vpop.permute.xlu1 %1574 }
 0xb25   :  { %v1577_v47 = vpop.permute.xlu0 %1576  ;;  %v3476_v34 = vsel %vm3428_vm6, -1e+09, %v1575_v25 }
 0xb26   :  { %2103 = vbcast.lane.b32.xlu0 %v2101_v42, 256  ;;  %2085 = vbcast.lane.b32.xlu1 %v2079_v1, 264  ;;  %v1713_v49 = vsel %vm165_vm2, %v3476_v34, -inf  ;;  %v3506_v20 = vsel %vm3412_vm5, -1e+09, %v1577_v47 }
 0xb28   :  { %v1579_v8 = vpop.permute.xlu1 %1578 }
 0xb29   :  { %v1581_v51 = vpop.permute.xlu0 %1580  ;;  %v3488_v19 = vsel %vm3428_vm6, -1e+09, %v1579_v8 }
 0xb2a   :  { %2125 = vbcast.lane.b32.xlu0 %v2123_v63, 256  ;;  %2096 = vbcast.lane.b32.xlu1 %v2090_v9, 264  ;;  %v1719_v1 = vsel %vm165_vm2, %v3488_v19, -inf }
 0xb2c   :  { %v1583_v41 = vpop.permute.xlu1 %1582 }
 0xb2d   :  { %v1585_v39 = vpop.permute.xlu0 %1584  ;;  %v3500_v9 = vsel %vm3428_vm6, -1e+09, %v1583_v41 }
 0xb2e   :  { %2136 = vbcast.lane.b32.xlu0 %v2134_v17, 256  ;;  %2107 = vbcast.lane.b32.xlu1 %v2101_v42, 264  ;;  %v3530_v32 = vsel %vm3412_vm5, -1e+09, %v1585_v39 }
 0xb2f   :  { %v1728_v10 = vsel %vm165_vm2, %v3530_v32, -inf }
 0xb30   :  { %v1587_v43 = vpop.permute.xlu1 %1586 }
 0xb31   :  { %v1589_v3 = vpop.permute.xlu0 %1588 }
 0xb32   :  { %2147 = vbcast.lane.b32.xlu0 %v2145_v2, 256  ;;  %2129 = vbcast.lane.b32.xlu1 %v2123_v63, 264  ;;  %v1725_v63 = vsel %vm165_vm2, %v3500_v9, -inf  ;;  %v3542_v31 = vsel %vm3412_vm5, -1e+09, %v1589_v3 }
 0xb33   :  { %v1734_v35 = vsel %vm165_vm2, %v3542_v31, -inf }
 0xb34   :  { %v1591_v56 = vpop.permute.xlu1 %1590 }
 0xb35   :  { %v1593_v42 = vpop.permute.xlu0 %1592  ;;  %v3524_v4 = vsel %vm3428_vm6, -1e+09, %v1591_v56 }
 0xb36   :  { %2158 = vbcast.lane.b32.xlu0 %v2156_v48, 256  ;;  %2140 = vbcast.lane.b32.xlu1 %v2134_v17, 264  ;;  %v3512_v17 = vsel %vm3428_vm6, -1e+09, %v1587_v43  ;;  %v1737_v7 = vsel %vm165_vm2, %v3524_v4, -inf }
 0xb37   :  { %v3554_v29 = vsel %vm3412_vm5, -1e+09, %v1593_v42 }
 0xb38   :  { %v1595_v54 = vpop.permute.xlu1 %1594  ;;  %v1740_v8 = vsel %vm165_vm2, %v3554_v29, -inf }
 0xb39   :  { %v1597_v62 = vpop.permute.xlu0 %1596  ;;  %v3536_v36 = vsel %vm3428_vm6, -1e+09, %v1595_v54 }
 0xb3a   :  { %2169 = vbcast.lane.b32.xlu0 %v2167_v50, 256  ;;  %2151 = vbcast.lane.b32.xlu1 %v2145_v2, 264  ;;  %v1716_v2 = vsel %vm165_vm2, %v3506_v20, -inf  ;;  %v1743_v61 = vsel %vm165_vm2, %v3536_v36, -inf }
 0xb3d   :  { %v1601_v18 = vpop.permute.xlu0 %1600 }
 0xb3e   :  { %2180 = vbcast.lane.b32.xlu0 %v2178_v58, 256  ;;  %2162 = vbcast.lane.b32.xlu1 %v2156_v48, 264  ;;  %v1599_v48 = vpop.permute.xlu1 %1598 }
 0xb3f   :  { %v3548_v0 = vsel %vm3428_vm6, -1e+09, %v1599_v48 }
 0xb41   :  { %v1605_v47 = vpop.permute.xlu0 %1604 }
 0xb42   :  { %2191 = vbcast.lane.b32.xlu0 %v2189_v60, 256  ;;  %2173 = vbcast.lane.b32.xlu1 %v2167_v50, 264  ;;  %v3518_v50 = vsel %vm3412_vm5, -1e+09, %v1581_v51  ;;  %v1603_v53 = vpop.permute.xlu1 %1602  ;;  %v3578_v51 = vsel %vm3412_vm5, -1e+09, %v1601_v18 }
 0xb43   :  { %v3560_v15 = vsel %vm3428_vm6, -1e+09, %v1603_v53  ;;  %v1752_v39 = vsel %vm165_vm2, %v3578_v51, -inf }
 0xb44   :  { %v1755_v41 = vsel %vm165_vm2, %v3560_v15, -inf }
 0xb45   :  { %v1609_v43 = vpop.permute.xlu0 %1608 }
 0xb46   :  { %2184 = vbcast.lane.b32.xlu1 %v2178_v58, 264  ;;  %v1731_v58 = vsel %vm165_vm2, %v3512_v17, -inf  ;;  %v1607_v25 = vpop.permute.xlu1 %1606  ;;  %v3602_v3 = vsel %vm3412_vm5, -1e+09, %v1609_v43 }
 0xb49   :  { %v1613_v54 = vpop.permute.xlu0 %1612 }
 0xb4a   :  { %2195 = vbcast.lane.b32.xlu1 %v2189_v60, 264  ;;  %v1722_v60 = vsel %vm165_vm2, %v3518_v50, -inf  ;;  %v3610_v14 = vsel %vm3412_vm5, -1e+09, %v1613_v54 }
 0xb61   :  { %1681 = vmax.xlane.f32.xlu0 %v1680_v6  ;;  %v1749_v6 = vsel %vm165_vm2, %v3548_v0, -inf }
 0xb65   :  { %1687 = vmax.xlane.f32.xlu0 %v1686_v26  ;;  %v3566_v26 = vsel %vm3412_vm5, -1e+09, %v1597_v62 }
 0xb69   :  { %1690 = vmax.xlane.f32.xlu0 %v1689_v45  ;;  %v1611_v45 = vpop.permute.xlu1 %1610 }
 0xb6d   :  { %1696 = vmax.xlane.f32.xlu0 %v1695_v55  ;;  %v3572_v55 = vsel %vm3428_vm6, -1e+09, %v1607_v25 }
 0xb6e   :  { %1684 = vmax.xlane.f32.xlu1 %v1683_v16  ;;  %v1746_v16 = vsel %vm165_vm2, %v3566_v26, -inf }
 0xb71   :  { %1702 = vmax.xlane.f32.xlu0 %v1701_v40  ;;  %v1761_v40 = vsel %vm165_vm2, %v3572_v55, -inf }
 0xb72   :  { %1693 = vmax.xlane.f32.xlu1 %v1692_v30  ;;  %v3584_v30 = vsel %vm3428_vm6, -1e+09, %v1611_v45 }
 0xb73   :  { %v1767_v56 = vsel %vm165_vm2, %v3584_v30, -inf }
 0xb75   :  { %1708 = vmax.xlane.f32.xlu0 %v1707_v52  ;;  %v1615_v52 = vpop.permute.xlu1 %1614 }
 0xb76   :  { %1699 = vmax.xlane.f32.xlu1 %v1698_v13  ;;  %v3590_v13 = vsel %vm3412_vm5, -1e+09, %v1605_v47 }
 0xb79   :  { %1714 = vmax.xlane.f32.xlu0 %v1713_v49  ;;  %v3596_v49 = vsel %vm3428_vm6, -1e+09, %v1615_v52 }
 0xb7a   :  { %1705 = vmax.xlane.f32.xlu1 %v1704_v24  ;;  %v1758_v24 = vsel %vm165_vm2, %v3590_v13, -inf }
 0xb7d   :  { %1720 = vmax.xlane.f32.xlu0 %v1719_v1  ;;  %v1773_v1 = vsel %vm165_vm2, %v3596_v49, -inf }
 0xb7e   :  { %1711 = vmax.xlane.f32.xlu1 %v1710_v57  ;;  %v1764_v57 = vsel %vm165_vm2, %v3602_v3, -inf }
 0xb81   :  { %1726 = vmax.xlane.f32.xlu0 %v1725_v63 }
 0xb82   :  { %1717 = vmax.xlane.f32.xlu1 %v1716_v2  ;;  %v1770_v2 = vsel %vm165_vm2, %v3610_v14, -inf }
 0xb84   :  { %v3612_v42 = vpop.permute.xlu0 %2041  ;;  %v3614_v63 = vpop.permute.xlu1 %2037 }
 0xb85   :  { %1732 = vmax.xlane.f32.xlu0 %v1731_v58 }
 0xb86   :  { %1723 = vmax.xlane.f32.xlu1 %v1722_v60 }
 0xb88   :  { %v3618_v48 = vpop.permute.xlu0 %2059  ;;  %v3620_v58 = vpop.permute.xlu1 %2048 }
 0xb89   :  { %1738 = vmax.xlane.f32.xlu0 %v1737_v7  ;;  %v3992_v7 = vld [vmem:[#allocation7_spill] sm:$0xff] }
 0xb8a   :  { %1729 = vmax.xlane.f32.xlu1 %v1728_v10  ;;  %v2112_v10 = vrot.slane %v3377_v37, %v3992_v7 }
 0xb8c   :  { %v3622_v60 = vpop.permute.xlu0 %2070  ;;  %v3624_v62 = vpop.permute.xlu1 %2052 }
 0xb8d   :  { %1744 = vmax.xlane.f32.xlu0 %v1743_v61 }
 0xb8e   :  { %1735 = vmax.xlane.f32.xlu1 %v1734_v35 }
 0xb90   :  { %v3626_v11 = vpop.permute.xlu0 %2081  ;;  %v3628_v53 = vpop.permute.xlu1 %2063 }
 0xb91   :  { %1750 = vmax.xlane.f32.xlu0 %v1749_v6 }
 0xb92   :  { %1741 = vmax.xlane.f32.xlu1 %v1740_v8 }
 0xb94   :  { %v3632_v18 = vpop.permute.xlu0 %2092  ;;  %v3634_v61 = vpop.permute.xlu1 %2074 }
 0xb95   :  { %1756 = vmax.xlane.f32.xlu0 %v1755_v41 }
 0xb96   :  { %1747 = vmax.xlane.f32.xlu1 %v1746_v16 }
 0xb98   :  { %v3636_v35 = vpop.permute.xlu0 %2103  ;;  %v3638_v25 = vpop.permute.xlu1 %2085 }
 0xb99   :  { %1762 = vmax.xlane.f32.xlu0 %v1761_v40 }
 0xb9a   :  { %1753 = vmax.xlane.f32.xlu1 %v1752_v39 }
 0xb9c   :  { %v3640_v6 = vpop.permute.xlu0 %2125  ;;  %v3642_v8 = vpop.permute.xlu1 %2096 }
 0xb9d   :  { %1768 = vmax.xlane.f32.xlu0 %v1767_v56  ;;  %3993 = vst [vmem:[#allocation6_spill] sm:$0xff] %v3640_v6 }
 0xb9e   :  { %1759 = vmax.xlane.f32.xlu1 %v1758_v24 }
 0xba0   :  { %v3644_v47 = vpop.permute.xlu0 %2136  ;;  %v3646_v45 = vpop.permute.xlu1 %2107 }
 0xba1   :  { %1774 = vmax.xlane.f32.xlu0 %v1773_v1  ;;  %3994 = vst [vmem:[#allocation2_spill] sm:$0xff] %v3644_v47 }
 0xba2   :  { %1765 = vmax.xlane.f32.xlu1 %v1764_v57 }
 0xba4   :  { %v3648_v41 = vpop.permute.xlu0 %2147  ;;  %v3650_v16 = vpop.permute.xlu1 %2129 }
 0xba5   :  { %3995 = vst [vmem:[#allocation5_spill] sm:$0xff] %v3648_v41 }
 0xba6   :  { %1771 = vmax.xlane.f32.xlu1 %v1770_v2 }
 0xba8   :  { %v3652_v43 = vpop.permute.xlu0 %2158  ;;  %v3654_v40 = vpop.permute.xlu1 %2140 }
 0xba9   :  { %3996 = vst [vmem:[#allocation7_spill] sm:$0xff] %v3652_v43  ;;  %3997 = vst [vmem:[#allocation8_spill] sm:$0xff] %v3654_v40 }
 0xbac   :  { %v3656_v39 = vpop.permute.xlu0 %2169  ;;  %v3658_v52 = vpop.permute.xlu1 %2151 }
 0xbad   :  { %3998 = vst [vmem:[#allocation9_spill] sm:$0xff] %v3656_v39  ;;  %3999 = vst [vmem:[#allocation10_spill] sm:$0xff] %v3658_v52 }
 0xbb0   :  { %v3660_v56 = vpop.permute.xlu0 %2180  ;;  %v3662_v24 = vpop.permute.xlu1 %2162 }
 0xbb1   :  { %4000 = vst [vmem:[#allocation11_spill] sm:$0xff] %v3660_v56  ;;  %4001 = vst [vmem:[#allocation12_spill] sm:$0xff] %v3662_v24 }
 0xbb4   :  { %v3664_v54 = vpop.permute.xlu0 %2191  ;;  %v3666_v1 = vpop.permute.xlu1 %2173 }
 0xbb5   :  { %4002 = vst [vmem:[#allocation13_spill] sm:$0xff] %v3664_v54  ;;  %4003 = vst [vmem:[#allocation14_spill] sm:$0xff] %v3666_v1 }
 0xbb7   :  { %2118 = vbcast.lane.b32.xlu1 %v2112_v10, 264  ;;  %2114 = vbcast.lane.b32.xlu0 %v2112_v10, 256 }
 0xbb8   :  { %v3669_v10 = vpop.permute.xlu1 %2184 }
 0xbbc   :  { %v3672_v6 = vpop.permute.xlu1 %2195 }
 0xbee   :  { %v1682_v57 = vpop.xlane.xlu0 %1681 }
 0xbef   :  { %v1776_v2 = vsub.f32 %v3418_v12, %v1682_v57 }
 0xbf1   :  { %v1808_v43 = vmul.f32 1.442695, %v1776_v2 }
 0xbf2   :  { %v1688_v41 = vpop.xlane.xlu0 %1687 }
 0xbf3   :  { %2646 = vpow2.f32 %v1808_v43  ;;  %v1778_v39 = vsub.f32 %v3425_v38, %v1688_v41 }
 0xbf5   :  { %v1812_v47 = vmul.f32 1.442695, %v1778_v39 }
 0xbf6   :  { %v1691_v52 = vpop.xlane.xlu0 %1690 }
 0xbf7   :  { %2648 = vpow2.f32 %v1812_v47  ;;  %v1779_v56 = vsub.f32 %v3436_v23, %v1691_v52 }
 0xbf9   :  { %v1814_v12 = vmul.f32 1.442695, %v1779_v56 }
 0xbfa   :  { %v1697_v54 = vpop.xlane.xlu0 %1696 }
 0xbfb   :  { %v1685_v24 = vpop.xlane.xlu1 %1684  ;;  %v1781_v57 = vsub.f32 %v3442_v44, %v1697_v54 }
 0xbfc   :  { %v1777_v1 = vsub.f32 %v3446_v21, %v1685_v24 }
 0xbfd   :  { %v3676_v40 = vpop.eup %2646  ;;  %v1818_v39 = vmul.f32 1.442695, %v1781_v57 }
 0xbfe   :  { %v1810_v2 = vmul.f32 1.442695, %v1777_v1  ;;  %v1703_v43 = vpop.xlane.xlu0 %1702  ;;  %v1872_v38 = vsel %vm165_vm2, %v3676_v40, 0.0 }
 0xbff   :  { %1873 = vadd.xlane.f32.xlu1 %v1872_v38  ;;  %v1694_v41 = vpop.xlane.xlu1 %1693  ;;  %v1783_v21 = vsub.f32 %v3452_v27, %v1703_v43 }
 0xc00   :  { %2650 = vpow2.f32 %v1810_v2  ;;  %v1780_v47 = vsub.f32 %v3458_v33, %v1694_v41 }
 0xc01   :  { %v3682_v23 = vpop.eup %2648  ;;  %2652 = vpow2.f32 %v1814_v12  ;;  %v1822_v1 = vmul.f32 1.442695, %v1783_v21 }
 0xc02   :  { %v1816_v52 = vmul.f32 1.442695, %v1780_v47  ;;  %v1709_v56 = vpop.xlane.xlu0 %1708  ;;  %v1878_v44 = vsel %vm165_vm2, %v3682_v23, 0.0 }
 0xc03   :  { %1879 = vadd.xlane.f32.xlu1 %v1878_v44  ;;  %v1700_v24 = vpop.xlane.xlu1 %1699  ;;  %v1785_v33 = vsub.f32 %v3464_v59, %v1709_v56 }
 0xc04   :  { %2654 = vpow2.f32 %v1816_v52  ;;  %v1782_v54 = vsub.f32 %v3470_v5, %v1700_v24 }
 0xc05   :  { %2656 = vpow2.f32 %v1818_v39  ;;  %v1826_v43 = vmul.f32 1.442695, %v1785_v33 }
 0xc06   :  { %v1820_v2 = vmul.f32 1.442695, %v1782_v54  ;;  %v1715_v38 = vpop.xlane.xlu0 %1714 }
 0xc07   :  { %v1706_v12 = vpop.xlane.xlu1 %1705  ;;  %v1787_v41 = vsub.f32 %v3476_v34, %v1715_v38 }
 0xc08   :  { %2658 = vpow2.f32 %v1820_v2  ;;  %v1784_v27 = vsub.f32 %v3482_v46, %v1706_v12 }
 0xc09   :  { %2660 = vpow2.f32 %v1822_v1  ;;  %v1830_v46 = vmul.f32 1.442695, %v1787_v41 }
 0xc0a   :  { %v3690_v57 = vpop.eup %2650  ;;  %v1824_v47 = vmul.f32 1.442695, %v1784_v27  ;;  %v1721_v52 = vpop.xlane.xlu0 %1720 }
 0xc0b   :  { %v3693_v44 = vpop.eup %2652  ;;  %v1712_v5 = vpop.xlane.xlu1 %1711  ;;  %v1875_v59 = vsel %vm165_vm2, %v3690_v57, 0.0  ;;  %v1789_v56 = vsub.f32 %v3488_v19, %v1721_v52 }
 0xc0c   :  { %2662 = vpow2.f32 %v1824_v47  ;;  %v1786_v39 = vsub.f32 %v3494_v22, %v1712_v5  ;;  %1876 = vadd.xlane.f32.xlu0 %v1875_v59  ;;  %v1881_v1 = vsel %vm165_vm2, %v3693_v44, 0.0 }
 0xc0d   :  { %2664 = vpow2.f32 %v1826_v43  ;;  %v1834_v19 = vmul.f32 1.442695, %v1789_v56 }
 0xc0e   :  { %v3698_v21 = vpop.eup %2654  ;;  %v1828_v24 = vmul.f32 1.442695, %v1786_v39  ;;  %v1727_v34 = vpop.xlane.xlu0 %1726 }
 0xc0f   :  { %v1718_v54 = vpop.xlane.xlu1 %1717  ;;  %v1884_v33 = vsel %vm165_vm2, %v3698_v21, 0.0  ;;  %v3705_v2 = vpop.eup %2656  ;;  %v1791_v12 = vsub.f32 %v3500_v9, %v1727_v34 }
 0xc10   :  { %2666 = vpow2.f32 %v1828_v24  ;;  %v1788_v22 = vsub.f32 %v3506_v20, %v1718_v54  ;;  %1882 = vadd.xlane.f32.xlu0 %v1881_v1  ;;  %1885 = vadd.xlane.f32.xlu1 %v1884_v33  ;;  %v1887_v47 = vsel %vm165_vm2, %v3705_v2, 0.0 }
 0xc11   :  { %2668 = vpow2.f32 %v1830_v46  ;;  %v1838_v9 = vmul.f32 1.442695, %v1791_v12 }
 0xc12   :  { %v3708_v38 = vpop.eup %2658  ;;  %v1832_v27 = vmul.f32 1.442695, %v1788_v22  ;;  %v1733_v43 = vpop.xlane.xlu0 %1732 }
 0xc13   :  { %v1724_v41 = vpop.xlane.xlu1 %1723  ;;  %v1890_v52 = vsel %vm165_vm2, %v3708_v38, 0.0  ;;  %v3715_v5 = vpop.eup %2660  ;;  %v1793_v39 = vsub.f32 %v3512_v17, %v1733_v43 }
 0xc14   :  { %2670 = vpow2.f32 %v1832_v27  ;;  %v1790_v20 = vsub.f32 %v3518_v50, %v1724_v41  ;;  %1888 = vadd.xlane.f32.xlu0 %v1887_v47  ;;  %1891 = vadd.xlane.f32.xlu1 %v1890_v52  ;;  %v1893_v34 = vsel %vm165_vm2, %v3715_v5, 0.0 }
 0xc15   :  { %2672 = vpow2.f32 %v1834_v19  ;;  %v1842_v17 = vmul.f32 1.442695, %v1793_v39 }
 0xc16   :  { %v3718_v59 = vpop.eup %2662  ;;  %v1836_v46 = vmul.f32 1.442695, %v1790_v20  ;;  %v1739_v56 = vpop.xlane.xlu0 %1738 }
 0xc17   :  { %v1730_v24 = vpop.xlane.xlu1 %1729  ;;  %v1896_v54 = vsel %vm165_vm2, %v3718_v59, 0.0  ;;  %v3725_v1 = vpop.eup %2664  ;;  %v1795_v22 = vsub.f32 %v3524_v4, %v1739_v56 }
 0xc18   :  { %2674 = vpow2.f32 %v1836_v46  ;;  %v1792_v50 = vsub.f32 %v3530_v32, %v1730_v24  ;;  %1894 = vadd.xlane.f32.xlu0 %v1893_v34  ;;  %1897 = vadd.xlane.f32.xlu1 %v1896_v54  ;;  %v1899_v43 = vsel %vm165_vm2, %v3725_v1, 0.0 }
 0xc19   :  { %2676 = vpow2.f32 %v1838_v9  ;;  %v1846_v4 = vmul.f32 1.442695, %v1795_v22 }
 0xc1a   :  { %v3728_v33 = vpop.eup %2666  ;;  %v1840_v19 = vmul.f32 1.442695, %v1792_v50  ;;  %v1745_v12 = vpop.xlane.xlu0 %1744 }
 0xc1b   :  { %v1736_v27 = vpop.xlane.xlu1 %1735  ;;  %v1902_v41 = vsel %vm165_vm2, %v3728_v33, 0.0  ;;  %v3735_v47 = vpop.eup %2668  ;;  %v1797_v20 = vsub.f32 %v3536_v36, %v1745_v12 }
 0xc1c   :  { %2678 = vpow2.f32 %v1840_v19  ;;  %v1794_v32 = vsub.f32 %v3542_v31, %v1736_v27  ;;  %1900 = vadd.xlane.f32.xlu0 %v1899_v43  ;;  %1903 = vadd.xlane.f32.xlu1 %v1902_v41  ;;  %v1905_v56 = vsel %vm165_vm2, %v3735_v47, 0.0 }
 0xc1d   :  { %2680 = vpow2.f32 %v1842_v17  ;;  %v1850_v36 = vmul.f32 1.442695, %v1797_v20 }
 0xc1e   :  { %v3738_v52 = vpop.eup %2670  ;;  %v1844_v9 = vmul.f32 1.442695, %v1794_v32  ;;  %v1751_v39 = vpop.xlane.xlu0 %1750 }
 0xc1f   :  { %v1742_v46 = vpop.xlane.xlu1 %1741  ;;  %v1908_v24 = vsel %vm165_vm2, %v3738_v52, 0.0  ;;  %v3745_v34 = vpop.eup %2672  ;;  %v1799_v50 = vsub.f32 %v3548_v0, %v1751_v39 }
 0xc20   :  { %2682 = vpow2.f32 %v1844_v9  ;;  %v1796_v31 = vsub.f32 %v3554_v29, %v1742_v46  ;;  %1906 = vadd.xlane.f32.xlu0 %v1905_v56  ;;  %1909 = vadd.xlane.f32.xlu1 %v1908_v24  ;;  %v1911_v12 = vsel %vm165_vm2, %v3745_v34, 0.0 }
 0xc21   :  { %2684 = vpow2.f32 %v1846_v4  ;;  %v1854_v0 = vmul.f32 1.442695, %v1799_v50 }
 0xc22   :  { %v3748_v54 = vpop.eup %2674  ;;  %v1848_v17 = vmul.f32 1.442695, %v1796_v31  ;;  %v1757_v22 = vpop.xlane.xlu0 %1756 }
 0xc23   :  { %v1748_v19 = vpop.xlane.xlu1 %1747  ;;  %v1914_v27 = vsel %vm165_vm2, %v3748_v54, 0.0  ;;  %v3755_v43 = vpop.eup %2676  ;;  %v1801_v32 = vsub.f32 %v3560_v15, %v1757_v22 }
 0xc24   :  { %2686 = vpow2.f32 %v1848_v17  ;;  %v1798_v29 = vsub.f32 %v3566_v26, %v1748_v19  ;;  %1912 = vadd.xlane.f32.xlu0 %v1911_v12  ;;  %1915 = vadd.xlane.f32.xlu1 %v1914_v27  ;;  %v1917_v39 = vsel %vm165_vm2, %v3755_v43, 0.0 }
 0xc25   :  { %2688 = vpow2.f32 %v1850_v36  ;;  %v1858_v15 = vmul.f32 1.442695, %v1801_v32 }
 0xc26   :  { %v3758_v41 = vpop.eup %2678  ;;  %v1852_v4 = vmul.f32 1.442695, %v1798_v29  ;;  %v1763_v20 = vpop.xlane.xlu0 %1762 }
 0xc27   :  { %v1754_v9 = vpop.xlane.xlu1 %1753  ;;  %v1920_v46 = vsel %vm165_vm2, %v3758_v41, 0.0  ;;  %v3765_v56 = vpop.eup %2680  ;;  %v1803_v31 = vsub.f32 %v3572_v55, %v1763_v20 }
 0xc28   :  { %2690 = vpow2.f32 %v1852_v4  ;;  %v1800_v26 = vsub.f32 %v3578_v51, %v1754_v9  ;;  %1918 = vadd.xlane.f32.xlu0 %v1917_v39  ;;  %1921 = vadd.xlane.f32.xlu1 %v1920_v46  ;;  %v1923_v22 = vsel %vm165_vm2, %v3765_v56, 0.0 }
 0xc29   :  { %2692 = vpow2.f32 %v1854_v0  ;;  %v1862_v55 = vmul.f32 1.442695, %v1803_v31 }
 0xc2a   :  { %v3768_v24 = vpop.eup %2682  ;;  %v1856_v36 = vmul.f32 1.442695, %v1800_v26  ;;  %v1769_v50 = vpop.xlane.xlu0 %1768 }
 0xc2b   :  { %v1760_v17 = vpop.xlane.xlu1 %1759  ;;  %v1926_v19 = vsel %vm165_vm2, %v3768_v24, 0.0  ;;  %v3775_v12 = vpop.eup %2684  ;;  %v1805_v29 = vsub.f32 %v3584_v30, %v1769_v50 }
 0xc2c   :  { %2694 = vpow2.f32 %v1856_v36  ;;  %v1802_v51 = vsub.f32 %v3590_v13, %v1760_v17  ;;  %1924 = vadd.xlane.f32.xlu0 %v1923_v22  ;;  %1927 = vadd.xlane.f32.xlu1 %v1926_v19  ;;  %v1929_v20 = vsel %vm165_vm2, %v3775_v12, 0.0 }
 0xc2d   :  { %2696 = vpow2.f32 %v1858_v15  ;;  %v1866_v30 = vmul.f32 1.442695, %v1805_v29 }
 0xc2e   :  { %v3778_v27 = vpop.eup %2686  ;;  %v1860_v0 = vmul.f32 1.442695, %v1802_v51  ;;  %v1775_v32 = vpop.xlane.xlu0 %1774 }
 0xc2f   :  { %v1766_v4 = vpop.xlane.xlu1 %1765  ;;  %v1932_v9 = vsel %vm165_vm2, %v3778_v27, 0.0  ;;  %v3785_v39 = vpop.eup %2688  ;;  %v1807_v26 = vsub.f32 %v3596_v49, %v1775_v32 }
 0xc30   :  { %2698 = vpow2.f32 %v1860_v0  ;;  %v1804_v13 = vsub.f32 %v3602_v3, %v1766_v4  ;;  %1930 = vadd.xlane.f32.xlu0 %v1929_v20  ;;  %1933 = vadd.xlane.f32.xlu1 %v1932_v9  ;;  %v1935_v36 = vsel %vm165_vm2, %v3785_v39, 0.0 }
 0xc31   :  { %2700 = vpow2.f32 %v1862_v55  ;;  %v1870_v19 = vmul.f32 1.442695, %v1807_v26 }
 0xc32   :  { %v3788_v46 = vpop.eup %2690  ;;  %v1864_v15 = vmul.f32 1.442695, %v1804_v13 }
 0xc33   :  { %v1772_v31 = vpop.xlane.xlu1 %1771  ;;  %v1938_v50 = vsel %vm165_vm2, %v3788_v46, 0.0  ;;  %v3795_v17 = vpop.eup %2692 }
 0xc34   :  { %2702 = vpow2.f32 %v1864_v15  ;;  %v1806_v3 = vsub.f32 %v3610_v14, %v1772_v31  ;;  %1936 = vadd.xlane.f32.xlu0 %v1935_v36  ;;  %1939 = vadd.xlane.f32.xlu1 %v1938_v50  ;;  %v1941_v51 = vsel %vm165_vm2, %v3795_v17, 0.0 }
 0xc35   :  { %2704 = vpow2.f32 %v1866_v30 }
 0xc36   :  { %v3798_v22 = vpop.eup %2694  ;;  %v1868_v49 = vmul.f32 1.442695, %v1806_v3  ;;  %v2200_v3 = vrot.slane %v3392_v28, %v3992_v7 }
 0xc37   :  { %v1944_v55 = vsel %vm165_vm2, %v3798_v22, 0.0  ;;  %v3804_v29 = vpop.eup %2696 }
 0xc38   :  { %2706 = vpow2.f32 %v1868_v49  ;;  %1942 = vadd.xlane.f32.xlu0 %v1941_v51  ;;  %1945 = vadd.xlane.f32.xlu1 %v1944_v55  ;;  %v1947_v14 = vsel %vm165_vm2, %v3804_v29, 0.0  ;;  %v3838_v51 = vpop.permute.xlu0 %2114 }
 0xc39   :  { %2708 = vpow2.f32 %v1870_v19  ;;  %v3836_v19 = vpop.permute.xlu1 %2118 }
 0xc3a   :  { %v3806_v0 = vpop.eup %2698 }
 0xc3b   :  { %v1950_v32 = vsel %vm165_vm2, %v3806_v0, 0.0  ;;  %v3812_v4 = vpop.eup %2700 }
 0xc3c   :  { %1948 = vadd.xlane.f32.xlu0 %v1947_v14  ;;  %1951 = vadd.xlane.f32.xlu1 %v1950_v32  ;;  %v1953_v9 = vsel %vm165_vm2, %v3812_v4, 0.0 }
 0xc3e   :  { %v3814_v20 = vpop.eup %2702 }
 0xc3f   :  { %v1956_v13 = vsel %vm165_vm2, %v3814_v20, 0.0  ;;  %v3820_v30 = vpop.eup %2704 }
 0xc40   :  { %1954 = vadd.xlane.f32.xlu0 %v1953_v9  ;;  %1957 = vadd.xlane.f32.xlu1 %v1956_v13  ;;  %v1959_v15 = vsel %vm165_vm2, %v3820_v30, 0.0 }
 0xc42   :  { %v3822_v26 = vpop.eup %2706 }
 0xc43   :  { %v1962_v31 = vsel %vm165_vm2, %v3822_v26, 0.0  ;;  %v3828_v36 = vpop.eup %2708 }
 0xc44   :  { %4004 = vst [vmem:[#allocation15_spill] sm:$0xff] %v3828_v36  ;;  %1960 = vadd.xlane.f32.xlu0 %v1959_v15  ;;  %1963 = vadd.xlane.f32.xlu1 %v1962_v31  ;;  %v1965_v50 = vsel %vm165_vm2, %v3828_v36, 0.0 }
 0xc48   :  { %1966 = vadd.xlane.f32.xlu0 %v1965_v50 }
 0xc55   :  { %2206 = vbcast.lane.b32.xlu1 %v2200_v3, 264 }
 0xc59   :  { %2388 = vrot.lane.b32.xlu1 %v3392_v28, %s2788_s4 }
 0xc5e   :  { %2202 = vbcast.lane.b32.xlu0 %v2200_v3, 256 }
 0xc62   :  { %2386 = vrot.lane.b32.xlu0 %v3377_v37, %s2788_s4 }
 0xc8c   :  { %v1874_v49 = vpop.xlane.xlu1 %1873 }
 0xc8d   :  { %2710 = vrcp.f32 %v1874_v49 }
 0xc90   :  { %v1880_v55 = vpop.xlane.xlu1 %1879 }
 0xc91   :  { %2712 = vrcp.f32 %v1880_v55 }
 0xc97   :  { %v2711_v7 = vpop.eup %2710 }
 0xc98   :  { %v2000_v37 = vmul.f32 %v2711_v7, %v3676_v40 }
 0xc99   :  { %v1877_v14 = vpop.xlane.xlu0 %1876 }
 0xc9a   :  { %2714 = vrcp.f32 %v1877_v14  ;;  %v2208_v14 = vmul.f32 %v3614_v63, %v2000_v37 }
 0xc9b   :  { %v2713_v15 = vpop.eup %2712 }
 0xc9c   :  { %v2002_v50 = vmul.f32 %v2713_v15, %v3682_v23  ;;  %v2240_v15 = vsel %vm165_vm2, %v2208_v14, 0.0 }
 0xc9d   :  { %v1883_v32 = vpop.xlane.xlu0 %1882  ;;  %v1886_v9 = vpop.xlane.xlu1 %1885 }
 0xc9e   :  { %2716 = vrcp.f32 %v1883_v32 }
 0xc9f   :  { %2718 = vrcp.f32 %v1886_v9 }
 0xca1   :  { %v1889_v13 = vpop.xlane.xlu0 %1888  ;;  %v1892_v28 = vpop.xlane.xlu1 %1891 }
 0xca2   :  { %2720 = vrcp.f32 %v1889_v13  ;;  %v2210_v13 = vmul.f32 %v3620_v58, %v2002_v50 }
 0xca3   :  { %2722 = vrcp.f32 %v1892_v28 }
 0xca4   :  { %v2715_v31 = vpop.eup %2714 }
 0xca5   :  { %v2001_v3 = vmul.f32 %v2715_v31, %v3690_v57  ;;  %v1895_v49 = vpop.xlane.xlu0 %1894  ;;  %v1898_v55 = vpop.xlane.xlu1 %1897 }
 0xca6   :  { %2724 = vrcp.f32 %v1895_v49 }
 0xca7   :  { %v2209_v32 = vmul.f32 %v3612_v42, %v2001_v3  ;;  %2726 = vrcp.f32 %v1898_v55  ;;  %v2249_v3 = vsel %vm165_vm2, %v2210_v13, 0.0 }
 0xca8   :  { %v2717_v9 = vpop.eup %2716 }
 0xca9   :  { %v2719_v36 = vpop.eup %2718  ;;  %v2241_v40 = vsel %vm165_vm2, %v2209_v32, 0.0  ;;  %v2003_v7 = vmul.f32 %v2717_v9, %v3693_v44  ;;  %v1901_v28 = vpop.xlane.xlu0 %1900 }
 0xcaa   :  { %v1904_v23 = vpop.xlane.xlu1 %1903  ;;  %v2004_v57 = vmul.f32 %v2719_v36, %v3698_v21  ;;  %2728 = vrcp.f32 %v1901_v28  ;;  %v2242_v37 = vadd.f32 %v2241_v40, %v2240_v15 }
 0xcab   :  { %v2211_v63 = vmul.f32 %v3624_v62, %v2003_v7  ;;  %2730 = vrcp.f32 %v1904_v23 }
 0xcac   :  { %v2721_v42 = vpop.eup %2720  ;;  %v2212_v50 = vmul.f32 %v3618_v48, %v2004_v57  ;;  %v2243_v32 = vrot.slane %v2242_v37, 4 }
 0xcad   :  { %v2723_v31 = vpop.eup %2722  ;;  %v2250_v58 = vsel %vm165_vm2, %v2211_v63, 0.0  ;;  %v2005_v44 = vmul.f32 %v2721_v42, %v3705_v2  ;;  %v1907_v49 = vpop.xlane.xlu0 %1906 }
 0xcae   :  { %v1910_v55 = vpop.xlane.xlu1 %1909  ;;  %v2251_v21 = vadd.f32 %v2250_v58, %v2249_v3  ;;  %v2006_v36 = vmul.f32 %v2723_v31, %v3708_v38  ;;  %2732 = vrcp.f32 %v1907_v49  ;;  %v2258_v7 = vsel %vm165_vm2, %v2212_v50, 0.0 }
 0xcaf   :  { %v2213_v14 = vmul.f32 %v3628_v53, %v2005_v44  ;;  %2734 = vrcp.f32 %v1910_v55  ;;  %v2244_v63 = vadd.f32 %v2243_v32, %v2242_v37 }
 0xcb0   :  { %v2725_v62 = vpop.eup %2724  ;;  %v2252_v9 = vrot.slane %v2251_v21, 4  ;;  %v2214_v40 = vmul.f32 %v3622_v60, %v2006_v36 }
 0xcb1   :  { %v2727_v13 = vpop.eup %2726  ;;  %v2259_v48 = vsel %vm165_vm2, %v2213_v14, 0.0  ;;  %v2007_v2 = vmul.f32 %v2725_v62, %v3715_v5  ;;  %v1913_v28 = vpop.xlane.xlu0 %1912  ;;  %v2245_v37 = vrot.slane %v2244_v63, 2 }
 0xcb2   :  { %v1916_v23 = vpop.xlane.xlu1 %1915  ;;  %v2260_v57 = vadd.f32 %v2259_v48, %v2258_v7  ;;  %v2008_v53 = vmul.f32 %v2727_v13, %v3718_v59  ;;  %2736 = vrcp.f32 %v1913_v28  ;;  %v2253_v42 = vadd.f32 %v2252_v9, %v2251_v21 }
 0xcb3   :  { %v2215_v38 = vmul.f32 %v3634_v61, %v2007_v2  ;;  %v2267_v60 = vsel %vm165_vm2, %v2214_v40, 0.0  ;;  %2738 = vrcp.f32 %v1916_v23  ;;  %v2246_v48 = vadd.f32 %v2245_v37, %v2244_v63 }
 0xcb4   :  { %v2729_v15 = vpop.eup %2728  ;;  %v2261_v3 = vrot.slane %v2260_v57, 4  ;;  %v2216_v5 = vmul.f32 %v3626_v11, %v2008_v53  ;;  %v2254_v21 = vrot.slane %v2253_v42, 2 }
 0xcb5   :  { %v2731_v31 = vpop.eup %2730  ;;  %v2268_v58 = vsel %vm165_vm2, %v2215_v38, 0.0  ;;  %v2009_v50 = vmul.f32 %v2729_v15, %v3725_v1  ;;  %v1919_v44 = vpop.xlane.xlu0 %1918 }
 0xcb6   :  { %v1922_v49 = vpop.xlane.xlu1 %1921  ;;  %v2269_v61 = vadd.f32 %v2268_v58, %v2267_v60  ;;  %v2010_v55 = vmul.f32 %v2731_v31, %v3728_v33  ;;  %2740 = vrcp.f32 %v1919_v44  ;;  %v2262_v14 = vadd.f32 %v2261_v3, %v2260_v57 }
 0xcb7   :  { %v2217_v59 = vmul.f32 %v3638_v25, %v2009_v50  ;;  %v2276_v32 = vsel %vm165_vm2, %v2216_v5, 0.0  ;;  %2742 = vrcp.f32 %v1922_v49  ;;  %v2255_v23 = vadd.f32 %v2254_v21, %v2253_v42 }
 0xcb8   :  { %v2733_v36 = vpop.eup %2732  ;;  %v2270_v62 = vrot.slane %v2269_v61, 4  ;;  %v2218_v7 = vmul.f32 %v3632_v18, %v2010_v55  ;;  %v2263_v57 = vrot.slane %v2262_v14, 2  ;;  %v2247_v50 = vrot.slane %v2246_v48, 1 }
 0xcb9   :  { %v2277_v9 = vsel %vm165_vm2, %v2217_v59, 0.0  ;;  %v1925_v11 = vpop.xlane.xlu0 %1924  ;;  %v2735_v1 = vpop.eup %2734  ;;  %v2011_v25 = vmul.f32 %v2733_v36, %v3735_v47  ;;  %v2256_v44 = vrot.slane %v2255_v23, 1 }
 0xcba   :  { %v1928_v40 = vpop.xlane.xlu1 %1927  ;;  %v2278_v13 = vadd.f32 %v2277_v9, %v2276_v32  ;;  %v2012_v33 = vmul.f32 %v2735_v1, %v3738_v52  ;;  %2744 = vrcp.f32 %v1925_v11  ;;  %v2271_v38 = vadd.f32 %v2270_v62, %v2269_v61 }
 0xcbb   :  { %2746 = vrcp.f32 %v1928_v40  ;;  %v2219_v53 = vmul.f32 %v3642_v8, %v2011_v25  ;;  %v2285_v52 = vsel %vm165_vm2, %v2218_v7, 0.0  ;;  %v2264_v49 = vadd.f32 %v2263_v57, %v2262_v14 }
 0xcbc   :  { %v2279_v2 = vrot.slane %v2278_v13, 4  ;;  %v2737_v28 = vpop.eup %2736  ;;  %v2220_v3 = vmul.f32 %v3636_v35, %v2012_v33  ;;  %v2272_v61 = vrot.slane %v2271_v38, 2 }
 0xcbd   :  { %v1931_v15 = vpop.xlane.xlu0 %1930  ;;  %v2739_v31 = vpop.eup %2738  ;;  %v2013_v18 = vmul.f32 %v2737_v28, %v3745_v34  ;;  %v2286_v63 = vsel %vm165_vm2, %v2219_v53, 0.0  ;;  %v2265_v40 = vrot.slane %v2264_v49, 1 }
 0xcbe   :  { %v1934_v60 = vpop.xlane.xlu1 %1933  ;;  %2748 = vrcp.f32 %v1931_v15  ;;  %v2280_v47 = vadd.f32 %v2279_v2, %v2278_v13  ;;  %v2287_v58 = vadd.f32 %v2286_v63, %v2285_v52  ;;  %v2014_v5 = vmul.f32 %v2739_v31, %v3748_v54 }
 0xcbf   :  { %2750 = vrcp.f32 %v1934_v60  ;;  %v2221_v42 = vmul.f32 %v3646_v45, %v2013_v18  ;;  %v2294_v34 = vsel %vm165_vm2, %v2220_v3, 0.0  ;;  %v2273_v1 = vadd.f32 %v2272_v61, %v2271_v38 }
 0xcc0   :  { %v2741_v8 = vpop.eup %2740  ;;  %v2281_v21 = vrot.slane %v2280_v47, 2  ;;  %v2288_v36 = vrot.slane %v2287_v58, 4  ;;  %v2222_v54 = vmul.f32 %v3838_v51, %v2014_v5  ;;  %v2248_v2 = vadd.f32 %v2247_v50, %v2246_v48  ;;  %v4006_v5 = vld [vmem:[#allocation6_spill] sm:$0xff] }
 0xcc1   :  { %v1937_v35 = vpop.xlane.xlu0 %1936  ;;  %v2295_v55 = vsel %vm165_vm2, %v2221_v42, 0.0  ;;  %v2015_v37 = vmul.f32 %v2741_v8, %v3755_v43  ;;  %v2743_v62 = vpop.eup %2742  ;;  %v2257_v51 = vadd.f32 %v2256_v44, %v2255_v23  ;;  %v2266_v18 = vadd.f32 %v2265_v40, %v2264_v49  ;;  %v4007_v8 = vld [vmem:[#allocation2_spill] sm:$0xff] }
 0xcc2   :  { %v1940_v59 = vpop.xlane.xlu1 %1939  ;;  %2752 = vrcp.f32 %v1937_v35  ;;  %v2296_v45 = vadd.f32 %v2295_v55, %v2294_v34  ;;  %v2289_v25 = vadd.f32 %v2288_v36, %v2287_v58  ;;  %v2282_v28 = vadd.f32 %v2281_v21, %v2280_v47  ;;  %v4005_v47 = vld [vmem:[#allocation8_spill] sm:$0xff] }
 0xcc3   :  { %2754 = vrcp.f32 %v1940_v59  ;;  %v2223_v32 = vmul.f32 %v3836_v19, %v2015_v37  ;;  %v2016_v57 = vmul.f32 %v2743_v62, %v3758_v41  ;;  %v2303_v38 = vsel %vm165_vm2, %v2222_v54, 0.0  ;;  %v4008_v62 = vld [vmem:[#allocation5_spill] sm:$0xff] }
 0xcc4   :  { %v2745_v14 = vpop.eup %2744  ;;  %v2297_v13 = vrot.slane %v2296_v45, 4  ;;  %v2274_v52 = vrot.slane %v2273_v1, 1  ;;  %v2290_v23 = vrot.slane %v2289_v25, 2  ;;  %v2409_v58 = vsel %vm2408_vm7, %v2257_v51, %v2248_v2 }
 0xcc5   :  { %v1943_v9 = vpop.xlane.xlu0 %1942  ;;  %v2747_v7 = vpop.eup %2746  ;;  %v2017_v43 = vmul.f32 %v2745_v14, %v3765_v56  ;;  %v2304_v33 = vsel %vm165_vm2, %v2223_v32, 0.0  ;;  %v2283_v44 = vrot.slane %v2282_v28, 1  ;;  %v2411_v37 = vsel %vm2410_vm8, %v2266_v18, %v2409_v58  ;;  %v4009_v32 = vld [vmem:[#allocation10_spill] sm:$0xff] }
 0xcc6   :  { %v1946_v11 = vpop.xlane.xlu1 %1945  ;;  %2756 = vrcp.f32 %v1943_v9  ;;  %v2018_v53 = vmul.f32 %v2747_v7, %v3768_v24  ;;  %v2298_v15 = vadd.f32 %v2297_v13, %v2296_v45  ;;  %v2305_v63 = vadd.f32 %v2304_v33, %v2303_v38  ;;  %v4010_v7 = vld [vmem:[#allocation7_spill] sm:$0xff] }
 0xcc7   :  { %2758 = vrcp.f32 %v1946_v11  ;;  %v2225_v48 = vmul.f32 %v3650_v16, %v2017_v43  ;;  %v2275_v34 = vadd.f32 %v2274_v52, %v2273_v1  ;;  %v2291_v36 = vadd.f32 %v2290_v23, %v2289_v25 }
 0xcc8   :  { %v2749_v19 = vpop.eup %2748  ;;  %v2226_v50 = vmul.f32 %v4007_v8, %v2018_v53  ;;  %v2299_v49 = vrot.slane %v2298_v15, 2  ;;  %v2306_v55 = vrot.slane %v2305_v63, 4  ;;  %v2284_v40 = vadd.f32 %v2283_v44, %v2282_v28 }
 0xcc9   :  { %v2751_v60 = vpop.eup %2750  ;;  %v2019_v31 = vmul.f32 %v2749_v19, %v3775_v12  ;;  %v1949_v56 = vpop.xlane.xlu0 %1948  ;;  %v2224_v12 = vmul.f32 %v4006_v5, %v2016_v57  ;;  %v2292_v38 = vrot.slane %v2291_v36, 1 }
 0xcca   :  { %v1952_v3 = vpop.xlane.xlu1 %1951  ;;  %2760 = vrcp.f32 %v1949_v56  ;;  %v2020_v24 = vmul.f32 %v2751_v60, %v3778_v27  ;;  %v2313_v27 = vsel %vm165_vm2, %v2225_v48, 0.0  ;;  %v2321_v11 = vsel %vm165_vm2, %v2226_v50, 0.0 }
 0xccb   :  { %v2227_v41 = vmul.f32 %v4005_v47, %v2019_v31  ;;  %2762 = vrcp.f32 %v1952_v3  ;;  %v2312_v9 = vsel %vm165_vm2, %v2224_v12, 0.0  ;;  %v2300_v1 = vadd.f32 %v2299_v49, %v2298_v15  ;;  %v4011_v15 = vld [vmem:[#allocation12_spill] sm:$0xff]  ;;  %v4013_v12 = vld [vmem:[#allocation14_spill] sm:$0xff] }
 0xccc   :  { %v2753_v42 = vpop.eup %2752  ;;  %v2228_v54 = vmul.f32 %v4008_v62, %v2020_v24  ;;  %v2307_v51 = vadd.f32 %v2306_v55, %v2305_v63  ;;  %v2314_v19 = vadd.f32 %v2313_v27, %v2312_v9  ;;  %v2413_v31 = vsel %vm2412_vm9, %v2275_v34, %v2411_v37  ;;  %v4014_v55 = vld [vmem:[#allocation11_spill] sm:$0xff] }
 0xccd   :  { %v2755_v61 = vpop.eup %2754  ;;  %v2021_v16 = vmul.f32 %v2753_v42, %v3785_v39  ;;  %v1955_v35 = vpop.xlane.xlu0 %1954  ;;  %v2322_v45 = vsel %vm165_vm2, %v2227_v41, 0.0  ;;  %v2301_v52 = vrot.slane %v2300_v1, 1  ;;  %v2293_v5 = vadd.f32 %v2292_v38, %v2291_v36 }
 0xcce   :  { %v1958_v59 = vpop.xlane.xlu1 %1957  ;;  %v2022_v21 = vmul.f32 %v2755_v61, %v3788_v46  ;;  %2764 = vrcp.f32 %v1955_v35  ;;  %v2323_v57 = vadd.f32 %v2322_v45, %v2321_v11  ;;  %v2330_v28 = vsel %vm165_vm2, %v2228_v54, 0.0 }
 0xccf   :  { %v2229_v14 = vmul.f32 %v4009_v32, %v2021_v16  ;;  %2766 = vrcp.f32 %v1958_v59  ;;  %v2308_v41 = vrot.slane %v2307_v51, 2  ;;  %v2315_v24 = vrot.slane %v2314_v19, 4 }
 0xcd0   :  { %v2757_v39 = vpop.eup %2756  ;;  %v2230_v43 = vmul.f32 %v4010_v7, %v2022_v21  ;;  %v2324_v58 = vrot.slane %v2323_v57, 4  ;;  %v2302_v59 = vadd.f32 %v2301_v52, %v2300_v1  ;;  %v2415_v62 = vsel %vm2414_vm10, %v2284_v40, %v2413_v31 }
 0xcd1   :  { %v2759_v13 = vpop.eup %2758  ;;  %v2331_v46 = vsel %vm165_vm2, %v2229_v14, 0.0  ;;  %v2023_v25 = vmul.f32 %v2757_v39, %v3795_v17  ;;  %v1961_v33 = vpop.xlane.xlu0 %1960  ;;  %v4012_v17 = vld [vmem:[#allocation9_spill] sm:$0xff]  ;;  %v2309_v44 = vadd.f32 %v2308_v41, %v2307_v51  ;;  %v2316_v36 = vadd.f32 %v2315_v24, %v2314_v19 }
 0xcd2   :  { %v1964_v2 = vpop.xlane.xlu1 %1963  ;;  %v2024_v53 = vmul.f32 %v2759_v13, %v3798_v22  ;;  %2768 = vrcp.f32 %v1961_v33  ;;  %v2332_v3 = vadd.f32 %v2331_v46, %v2330_v28  ;;  %v2339_v48 = vsel %vm165_vm2, %v2230_v43, 0.0  ;;  %v4015_v43 = vld [vmem:[#allocation13_spill] sm:$0xff] }
 0xcd3   :  { %v2231_v60 = vmul.f32 %v4011_v15, %v2023_v25  ;;  %2770 = vrcp.f32 %v1964_v2  ;;  %v2310_v21 = vrot.slane %v2309_v44, 1  ;;  %v2325_v54 = vadd.f32 %v2324_v58, %v2323_v57 }
 0xcd4   :  { %v2761_v56 = vpop.eup %2760  ;;  %v2232_v18 = vmul.f32 %v4012_v17, %v2024_v53  ;;  %v2333_v61 = vrot.slane %v2332_v3, 4  ;;  %v2417_v39 = vsel %vm2416_vm11, %v2293_v5, %v2415_v62  ;;  %v2317_v15 = vrot.slane %v2316_v36, 2 }
 0xcd5   :  { %v2763_v63 = vpop.eup %2762  ;;  %v2340_v22 = vsel %vm165_vm2, %v2231_v60, 0.0  ;;  %v2025_v23 = vmul.f32 %v2761_v56, %v3804_v29  ;;  %v1967_v47 = vpop.xlane.xlu0 %1966  ;;  %v2311_v14 = vadd.f32 %v2310_v21, %v2309_v44  ;;  %v2419_v13 = vsel %vm2418_vm12, %v2302_v59, %v2417_v39 }
 0xcd6   :  { %v2341_v42 = vadd.f32 %v2340_v22, %v2339_v48  ;;  %v2026_v50 = vmul.f32 %v2763_v63, %v3806_v0  ;;  %2772 = vrcp.f32 %v1967_v47  ;;  %v2348_v35 = vsel %vm165_vm2, %v2232_v18, 0.0  ;;  %v4016_v18 = vld [vmem:[#allocation15_spill] sm:$0xff]  ;;  %v2207_v22 = vpop.permute.xlu1 %2206 }
 0xcd7   :  { %v2233_v8 = vmul.f32 %v4013_v12, %v2025_v23  ;;  %v2334_v9 = vadd.f32 %v2333_v61, %v2332_v3  ;;  %v2421_v40 = vsel %vm2420_vm13, %v2311_v14, %v2419_v13  ;;  %v2326_v51 = vrot.slane %v2325_v54, 2 }
 0xcd8   :  { %v2765_v49 = vpop.eup %2764  ;;  %v2342_v16 = vrot.slane %v2341_v42, 4  ;;  %v2234_v37 = vmul.f32 %v4014_v55, %v2026_v50  ;;  %2429 = vrot.lane.b32.xlu0 %v2421_v40, %s2785_s7  ;;  %v2318_v41 = vadd.f32 %v2317_v15, %v2316_v36 }
 0xcd9   :  { %v2767_v34 = vpop.eup %2766  ;;  %v2349_v29 = vsel %vm165_vm2, %v2233_v8, 0.0  ;;  %v2027_v27 = vmul.f32 %v2765_v49, %v3812_v4  ;;  %v2335_v57 = vrot.slane %v2334_v9, 2  ;;  %v2203_v56 = vpop.permute.xlu0 %2202  ;;  %v2327_v48 = vadd.f32 %v2326_v51, %v2325_v54 }
 0xcda   :  { %v2350_v45 = vadd.f32 %v2349_v29, %v2348_v35  ;;  %v2028_v0 = vmul.f32 %v2767_v34, %v3814_v20  ;;  %v2343_v11 = vadd.f32 %v2342_v16, %v2341_v42  ;;  %v2357_v4 = vsel %vm165_vm2, %v2234_v37, 0.0 }
 0xcdb   :  { %v2235_v32 = vmul.f32 %v3669_v10, %v2027_v27  ;;  %v2336_v23 = vadd.f32 %v2335_v57, %v2334_v9  ;;  %v2328_v8 = vrot.slane %v2327_v48, 1  ;;  %v2319_v16 = vrot.slane %v2318_v41, 1  ;;  %v2389_v57 = vpop.permute.xlu1 %2388 }
 0xcdc   :  { %v2351_v1 = vrot.slane %v2350_v45, 4  ;;  %v2769_v46 = vpop.eup %2768  ;;  %v2236_v20 = vmul.f32 %v4015_v43, %v2028_v0  ;;  %v2344_v60 = vrot.slane %v2343_v11, 2 }
 0xcdd   :  { %v2358_v7 = vsel %vm165_vm2, %v2235_v32, 0.0  ;;  %v2771_v25 = vpop.eup %2770  ;;  %v2029_v2 = vmul.f32 %v2769_v46, %v3820_v30  ;;  %v2337_v61 = vrot.slane %v2336_v23, 1  ;;  %v2329_v37 = vadd.f32 %v2328_v8, %v2327_v48 }
 0xcde   :  { %v2352_v33 = vadd.f32 %v2351_v1, %v2350_v45  ;;  %v2359_v10 = vadd.f32 %v2358_v7, %v2357_v4  ;;  %v2030_v19 = vmul.f32 %v2771_v25, %v3822_v26  ;;  %v2366_v31 = vsel %vm165_vm2, %v2236_v20, 0.0  ;;  %v2387_v25 = vpop.permute.xlu0 %2386 }
 0xcdf   :  { %v2237_v53 = vmul.f32 %v3672_v6, %v2029_v2  ;;  %v2345_v24 = vadd.f32 %v2344_v60, %v2343_v11  ;;  %v2338_v36 = vadd.f32 %v2337_v61, %v2336_v23  ;;  %v2320_v0 = vadd.f32 %v2319_v16, %v2318_v41 }
 0xce0   :  { %v2360_v38 = vrot.slane %v2359_v10, 4  ;;  %v2773_v28 = vpop.eup %2772  ;;  %v2353_v3 = vrot.slane %v2352_v33, 2  ;;  %v2238_v52 = vmul.f32 %v2203_v56, %v2030_v19 }
 0xce1   :  { %v2367_v17 = vsel %vm165_vm2, %v2237_v53, 0.0  ;;  %v2031_v30 = vmul.f32 %v2773_v28, %v4016_v18  ;;  %v2346_v59 = vrot.slane %v2345_v24, 1  ;;  %v2422_v9 = vsel %vm2408_vm7, %v2329_v37, %v2320_v0  ;;  %v4018_v53 = vld [vmem:[#allocation4_spill] sm:$0xff] }
 0xce2   :  { %v2361_v63 = vadd.f32 %v2360_v38, %v2359_v10  ;;  %v2368_v26 = vadd.f32 %v2367_v17, %v2366_v31  ;;  %v2375_v5 = vsel %vm165_vm2, %v2238_v52, 0.0  ;;  %v2354_v12 = vadd.f32 %v2353_v3, %v2352_v33  ;;  %v4017_v33 = vld [vmem:[#allocation3_spill] sm:$0xff] }
 0xce3   :  { %v2239_v47 = vmul.f32 %v2207_v22, %v2031_v30  ;;  %v2347_v62 = vadd.f32 %v2346_v59, %v2345_v24  ;;  %v2423_v1 = vsel %vm2410_vm8, %v2338_v36, %v2422_v9  ;;  %v2435_v10 = vsel %vm634_vm0, %v4017_v33, %v2387_v25 }
 0xce4   :  { %v2362_v6 = vrot.slane %v2361_v63, 2  ;;  %v2369_v58 = vrot.slane %v2368_v26, 4  ;;  %v2355_v29 = vrot.slane %v2354_v12, 1  ;;  %v2436_v38 = vsel %vm634_vm0, %v4018_v53, %v2389_v57 }
 0xce5   :  { %v2376_v42 = vsel %vm165_vm2, %v2239_v47, 0.0  ;;  %v2424_v46 = vsel %vm2412_vm9, %v2347_v62, %v2423_v1 }
 0xce6   :  { %v2377_v50 = vadd.f32 %v2376_v42, %v2375_v5  ;;  %v2363_v44 = vadd.f32 %v2362_v6, %v2361_v63  ;;  %v2370_v49 = vadd.f32 %v2369_v58, %v2368_v26  ;;  %v2356_v32 = vadd.f32 %v2355_v29, %v2354_v12 }
 0xce8   :  { %v2378_v35 = vrot.slane %v2377_v50, 4  ;;  %v2371_v34 = vrot.slane %v2370_v49, 2  ;;  %v2364_v27 = vrot.slane %v2363_v44, 1  ;;  %v2425_v4 = vsel %vm2414_vm10, %v2356_v32, %v2424_v46 }
 0xcea   :  { %v2379_v55 = vadd.f32 %v2378_v35, %v2377_v50  ;;  %v2372_v21 = vadd.f32 %v2371_v34, %v2370_v49  ;;  %v2365_v39 = vadd.f32 %v2364_v27, %v2363_v44 }
 0xcec   :  { %v2380_v45 = vrot.slane %v2379_v55, 2  ;;  %v2373_v54 = vrot.slane %v2372_v21, 1  ;;  %v2426_v43 = vsel %vm2416_vm11, %v2365_v39, %v2425_v4 }
 0xcee   :  { %v2381_v14 = vadd.f32 %v2380_v45, %v2379_v55  ;;  %v2374_v11 = vadd.f32 %v2373_v54, %v2372_v21 }
 0xcf0   :  { %v2382_v13 = vrot.slane %v2381_v14, 1  ;;  %v2427_v20 = vsel %vm2418_vm12, %v2374_v11, %v2426_v43 }
 0xcf2   :  { %v2383_v7 = vadd.f32 %v2382_v13, %v2381_v14 }
 0xcf4   :  { %v2428_v40 = vsel %vm2420_vm13, %v2383_v7, %v2427_v20 }
 0xcf5   :  { %2431 = vrot.lane.b32.xlu1 %v2428_v40, %s2785_s7 }
 0xd4a   :  { %v2430_v2 = vpop.permute.xlu0 %2429 }
 0xd4b   :  { %v2438_v51 = vsel %vm2437_vm14, %v2435_v10, %v2430_v2 }
 0xd4c   :  { %v2440_v19 = vsel %vm115_vm1, %v2438_v51, 0.0 }
 0xd4d   :  { %2442 = vst [vmem:[%s3967_s5] sm:$0xff] %v2440_v19 }
 0xd67   :  { %v2432_v28 = vpop.permute.xlu1 %2431 }
 0xd68   :  { %v2439_v15 = vsel %vm2437_vm14, %v2436_v38, %v2432_v28 }
 0xd69   :  { %v2441_v60 = vsel %vm115_vm1, %v2439_v15, 0.0 }
 0xd6a   :  { %2443 = vst [vmem:[%s3967_s5 + $0x8] sm:$0xff] %v2441_v60 }

</bundles_post_ra>
